<compile_context>
chip_gen: v7x
topology: tpu7x:2x2x1
jax: 0.10.0
libtpu: 0.0.40
codegen_flags: <defaults>
</compile_context>

<pallas_src>
import numpy as np
import jax
import jax.numpy as jnp
from jax.experimental import pallas as pl
from jax.experimental.pallas import tpu as pltpu

HIDDEN = 32            # LSTM hidden size per encoder
ENC_OUT = 64           # TrajectoryObjectEncoder output width
HEADS = 4
HEAD_DIM = ENC_OUT // HEADS
OUT_DIM = 128
LN_EPS = 1e-5
BN_EPS = 1e-5

H2 = 2 * HIDDEN        # merged hidden width (agent | object) = 64
G = 8 * HIDDEN         # merged gate width = 256


def _round_up(x, m):
    return ((x + m - 1) // m) * m


# =============================================================================
# Fused kernel factory.  All shape constants and slab offsets are static.
# =============================================================================
def _make_kernel(B, NOBJ, T, F, R_pad, offs_a, offs_b):
    S = 1 + NOBJ
    NO = B * NOBJ
    KX = 2 * F + 1                      # merged input width (+1 bias column)

    def kernel(x_ref, sa_ref, sb_ref, out_ref):
        # ---------- static parameter slices out of the two slabs ----------
        w_ih = sa_ref[offs_a["w_ih"]:offs_a["w_ih"] + KX, :]            # (2F+1,256) f32
        w_hh = sa_ref[offs_a["w_hh"]:offs_a["w_hh"] + H2, :]            # (64,256)  f32
        w_qkv = sa_ref[offs_a["w_qkv"]:offs_a["w_qkv"] + ENC_OUT, :]    # (64,256)  f32
        vecs = sa_ref[offs_a["vec"]:offs_a["vec"] + 8, :]               # (8,256)   f32
        b_qkv = vecs[0:1, :]                   # [bq*scale | bk | bv | 0]   (1,256)
        t_enc = vecs[1:2, 0:2 * ENC_OUT]       # folded Linear bias + BN shift (1,128)
        bo = vecs[2:3, 0:ENC_OUT]              # (1,64)
        ln_g = vecs[3:4, 0:OUT_DIM]            # (1,128)
        ln_b = vecs[4:5, 0:OUT_DIM]            # (1,128)
        b_fin = vecs[5:6, 0:OUT_DIM]           # (1,128)

        w_lin = sb_ref[offs_b["w_lin"]:offs_b["w_lin"] + T * H2, :]             # (T*64,128) bf16
        head_blk = sb_ref[offs_b["head"]:offs_b["head"] + ENC_OUT, 0:ENC_OUT]   # (64,64)   bf16
        wo = sb_ref[offs_b["wo"]:offs_b["wo"] + ENC_OUT, 0:ENC_OUT]             # (64,64)   bf16
        w_fin = sb_ref[offs_b["w_fin"]:offs_b["w_fin"] + OUT_DIM, :]            # (128,128) bf16

        # ---------- merged LSTM encoders (agent cols 0:32, objects cols 32:64) ----
        # x_ref: (T*R_pad, 2F+1) time-major with a ones column; one hoisted 2D
        # input projection for every (timestep,row); the gate-permuted biases
        # (b_ih + b_hh) ride on the ones column.
        xz = jnp.dot(x_ref[...], w_ih, preferred_element_type=jnp.float32)   # (T*R_pad, 256)

        h = jnp.zeros((R_pad, H2), jnp.float32)    # [agent h | object h]
        c = jnp.zeros((R_pad, H2), jnp.float32)
        h_steps = []
        # Static unroll: T is small/fixed here.
        # TODO(synk): for long T switch to lax.fori_loop carrying (h, c) to bound
        #             code size / vreg live ranges.
        # TODO(synk): on v5e/v6e, pltpu.matmul_push_rhs could pin w_hh in MXU
        #             weight registers across the T loop (skipped for portability).
        for t in range(T):
            z = xz[t * R_pad:(t + 1) * R_pad, :] + jnp.dot(
                h, w_hh, preferred_element_type=jnp.float32)              # (R_pad, 256)
            # merged gate layout: [i | f | o] sigmoid (192 lanes), [g] tanh (64)
            sig = jax.nn.sigmoid(z[:, 0:3 * H2])
            g = jnp.tanh(z[:, 3 * H2:4 * H2])
            c = sig[:, H2:2 * H2] * c + sig[:, 0:H2] * g
            h = sig[:, 2 * H2:3 * H2] * jnp.tanh(c)
            h_steps.append(h)

        hseq = jnp.concatenate(h_steps, axis=-1)           # (R_pad, T*64)
        # Dropout(0.5) is identity in eval mode; LeakyReLU(0.1).
        hseq = jnp.where(hseq > 0, hseq, 0.1 * hseq)
        # Single block-structured output projection for BOTH encoders; BN scale
        # folded into the weight, BN shift + Linear bias folded into t_enc.
        yenc = jnp.dot(hseq.astype(jnp.bfloat16), w_lin,
                       preferred_element_type=jnp.float32) + t_enc        # (R_pad, 128)

        agent_feat = yenc[0:B, 0:ENC_OUT]                   # (B, 64)
        obj_feat = yenc[0:NO, ENC_OUT:2 * ENC_OUT]          # (B*NOBJ, 64)

        # ---------- MultiHeadAttention(64, 4, ReLU) on the agent token ----------
        # Token slab assembled as a VALUE (no scratch stores): (B, S, 64)
        allf = jnp.concatenate(
            [agent_feat[:, None, :], obj_feat.reshape(B, NOBJ, ENC_OUT)], axis=1)
        allf2 = allf.reshape(B * S, ENC_OUT)

        # Fused q/k/v projection as one 2D matmul.  1/sqrt(head_dim) is folded
        # into the q block (valid: ReLU commutes with a positive scale).
        qkv = jnp.maximum(
            jnp.dot(allf2, w_qkv, preferred_element_type=jnp.float32) + b_qkv, 0.0)
        k3 = qkv[:, ENC_OUT:2 * ENC_OUT].reshape(B, S, ENC_OUT)
        v3 = qkv[:, 2 * ENC_OUT:3 * ENC_OUT].reshape(B, S, ENC_OUT)
        q0 = qkv[:, 0:ENC_OUT].reshape(B, S, ENC_OUT)[:, 0:1, :]    # agent query only

        # Per-head score reduction broadcast to every lane of its head via one
        # block-of-ones (64,64) matmul -> lane-dense (B, S, 64), no 4-wide values.
        qk2 = (q0 * k3).reshape(B * S, ENC_OUT)
        sfull = jnp.dot(qk2.astype(jnp.bfloat16), head_blk,
                        preferred_element_type=jnp.float32).reshape(B, S, ENC_OUT)
        m = jnp.max(sfull, axis=1, keepdims=True)
        e = jnp.exp(sfull - m)                              # softmax numerator
        num = jnp.sum(e * v3, axis=1)                       # (B, 64)
        den = jnp.sum(e, axis=1)                            # per-head denominator
        # approx reciprocal: ~1e-3 rel err, well inside the test tolerance.
        att = num * pl.reciprocal(den, approx=True)
        att0 = jnp.maximum(
            jnp.dot(att.astype(jnp.bfloat16), wo,
                    preferred_element_type=jnp.float32) + bo, 0.0)      # output ReLU

        # ------- concat + LayerNorm(128) + Linear(128,128) + LeakyReLU(0.3) -------
        feat = jnp.concatenate([agent_feat, att0], axis=-1)             # (B, 128)
        mean = jnp.mean(feat, axis=-1, keepdims=True)
        var = jnp.mean((feat - mean) ** 2, axis=-1, keepdims=True)
        normed = (feat - mean) * jax.lax.rsqrt(var + LN_EPS) * ln_g + ln_b
        z = jnp.dot(normed.astype(jnp.bfloat16), w_fin,
                    preferred_element_type=jnp.float32) + b_fin
        out_ref[...] = jnp.where(z > 0, z, 0.3 * z)                     # LeakyReLU(0.3)

    return kernel


# =============================================================================
# Wrapper: one gridless pallas_call, 3 inputs (data + two parameter slabs).
# =============================================================================
def trajectory_attention_encoder(agent_hist, objects_hist, params):
    """agent_hist: (B, T, F); objects_hist: (B, Nobj, T, F).  Returns (B, 128)."""
    B, NOBJ, T, F = objects_hist.shape
    NO = B * NOBJ
    R_pad = _round_up(max(B, NO), 8)

    # Merged, time-major, bias-augmented input slab (layout plumbing only):
    #   cols [0:F)  = agent features  (rows 0:B)
    #   cols [F:2F) = object features (rows 0:B*NOBJ)
    #   col  2F     = 1.0 (carries the folded LSTM biases)
    ag = jnp.transpose(agent_hist, (1, 0, 2))                            # (T, B, F)
    ob = jnp.transpose(objects_hist.reshape(NO, T, F), (1, 0, 2))        # (T, NO, F)
    x_m = jnp.zeros((T, R_pad, 2 * F + 1), jnp.float32)
    x_m = x_m.at[:, :B, 0:F].set(ag)
    x_m = x_m.at[:, :NO, F:2 * F].set(ob)
    x_m = x_m.at[:, :, 2 * F].set(1.0)
    x_m = x_m.reshape(T * R_pad, 2 * F + 1)

    kernel = _make_kernel(B, NOBJ, T, F, R_pad, params["offs_a"], params["offs_b"])
    return pl.pallas_call(
        kernel,
        out_shape=jax.ShapeDtypeStruct((B, OUT_DIM), jnp.float32),
        in_specs=[pl.BlockSpec(memory_space=pltpu.MemorySpace.VMEM)] * 3,
        out_specs=pl.BlockSpec(memory_space=pltpu.MemorySpace.VMEM),
        # Gridless: at these shapes a single grid point minimizes launch/DMA cost.
        # TODO(synk): for large B*NOBJ add a "parallel" grid axis over row blocks
        #   (2 TensorCores on v7x) and size blocks for 64 MiB VMEM there.
    )(x_m, params["slab_a"], params["slab_b"])


# =============================================================================
# Deterministic parameter construction (synthetic weights, PyTorch shapes)
# =============================================================================
def init_raw_params(key, n_features, trajectory_length):
    keys = iter(jax.random.split(key, 64))

    def nrm(shape, scale=0.1):
        return jax.random.normal(next(keys), shape, jnp.float32) * scale

    def enc():
        return dict(
            w_ih=nrm((4 * HIDDEN, n_features), 0.3),
            w_hh=nrm((4 * HIDDEN, HIDDEN), 0.3),
            b_ih=nrm((4 * HIDDEN,), 0.1),
            b_hh=nrm((4 * HIDDEN,), 0.1),
            w_lin=nrm((ENC_OUT, trajectory_length * HIDDEN), 0.1),
            b_lin=nrm((ENC_OUT,), 0.1),
            bn_gamma=1.0 + nrm((ENC_OUT,), 0.1),
            bn_beta=nrm((ENC_OUT,), 0.1),
            bn_mean=nrm((ENC_OUT,), 0.1),
            bn_var=1.0 + jax.random.uniform(next(keys), (ENC_OUT,), jnp.float32) * 0.5,
        )

    return dict(
        agent_enc=enc(), object_enc=enc(),
        wq=nrm((ENC_OUT, ENC_OUT)), bq=nrm((ENC_OUT,)),
        wk=nrm((ENC_OUT, ENC_OUT)), bk=nrm((ENC_OUT,)),
        wv=nrm((ENC_OUT, ENC_OUT)), bv=nrm((ENC_OUT,)),
        wo=nrm((ENC_OUT, ENC_OUT)), bo=nrm((ENC_OUT,)),
        ln_gamma=1.0 + nrm((OUT_DIM,), 0.1), ln_beta=nrm((OUT_DIM,), 0.1),
        w_fin=nrm((OUT_DIM, OUT_DIM)), b_fin=nrm((OUT_DIM,)),
    )


def prep_params(raw, n_features, trajectory_length):
    """Pack all module parameters into two contiguous slabs (+ static offsets)."""
    F, T = n_features, trajectory_length
    Hh = HIDDEN

    def np_(x):
        return np.asarray(x, np.float32)

    # Merged gate column layout, each block HIDDEN wide:
    #   [i_a, i_o, f_a, f_o, o_a, o_o, g_a, g_o]
    col = {("i", "a"): 0, ("i", "o"): 1, ("f", "a"): 2, ("f", "o"): 3,
           ("o", "a"): 4, ("o", "o"): 5, ("g", "a"): 6, ("g", "o"): 7}

    w_ih_aug = np.zeros((2 * F + 1, G), np.float32)    # + bias row (ones column)
    w_hh_m = np.zeros((H2, G), np.float32)             # block-diagonal
    w_lin_m = np.zeros((T * H2, 2 * ENC_OUT), np.float32)
    t_enc = np.zeros((2 * ENC_OUT,), np.float32)

    encs = (("a", raw["agent_enc"], 0, 0, 0),
            ("o", raw["object_enc"], F, Hh, ENC_OUT))
    for grp, enc, xrow0, hcol0, ycol0 in encs:
        w_ih, w_hh = np_(enc["w_ih"]), np_(enc["w_hh"])
        b = np_(enc["b_ih"]) + np_(enc["b_hh"])
        blocks = {"i": 0, "f": 1, "g": 2, "o": 3}        # PyTorch LSTM row order
        for gname, gi in blocks.items():
            c0 = col[(gname, grp)] * Hh
            w_ih_aug[xrow0:xrow0 + F, c0:c0 + Hh] = w_ih[gi * Hh:(gi + 1) * Hh].T
            w_ih_aug[2 * F, c0:c0 + Hh] = b[gi * Hh:(gi + 1) * Hh]
            w_hh_m[hcol0:hcol0 + Hh, c0:c0 + Hh] = w_hh[gi * Hh:(gi + 1) * Hh].T
        # Output Linear(T*32 -> 64) with eval-mode BatchNorm folded in.
        s = np_(enc["bn_gamma"]) / np.sqrt(np_(enc["bn_var"]) + BN_EPS)
        w_lin = np_(enc["w_lin"]) * s[:, None]                        # (64, T*H)
        for t in range(T):
            w_lin_m[t * H2 + hcol0:t * H2 + hcol0 + Hh, ycol0:ycol0 + ENC_OUT] = \
                w_lin[:, t * Hh:(t + 1) * Hh].T
        t_enc[ycol0:ycol0 + ENC_OUT] = (np_(enc["b_lin"]) * s + np_(enc["bn_beta"])
                                        - np_(enc["bn_mean"]) * s)

    # Fused q/k/v projection (attention scale folded into the q block).
    scale = 1.0 / np.sqrt(float(HEAD_DIM))
    w_qkv = np.zeros((ENC_OUT, G), np.float32)
    w_qkv[:, 0:ENC_OUT] = np_(raw["wq"]).T * scale
    w_qkv[:, ENC_OUT:2 * ENC_OUT] = np_(raw["wk"]).T
    w_qkv[:, 2 * ENC_OUT:3 * ENC_OUT] = np_(raw["wv"]).T
    b_qkv = np.zeros((G,), np.float32)
    b_qkv[0:ENC_OUT] = np_(raw["bq"]) * scale
    b_qkv[ENC_OUT:2 * ENC_OUT] = np_(raw["bk"])
    b_qkv[2 * ENC_OUT:3 * ENC_OUT] = np_(raw["bv"])

    # Block-of-ones head matrix: head_blk[d, e] = 1 iff head(d) == head(e).
    hid = np.arange(ENC_OUT) // HEAD_DIM
    head_blk = (hid[:, None] == hid[None, :]).astype(np.float32)

    # ---- slab A: f32, width 256, sublane-aligned sections ----
    offs_a = {"w_ih": 0}
    offs_a["w_hh"] = _round_up(2 * F + 1, 8)
    offs_a["w_qkv"] = offs_a["w_hh"] + H2
    offs_a["vec"] = offs_a["w_qkv"] + ENC_OUT
    rows_a = offs_a["vec"] + 8
    slab_a = np.zeros((rows_a, G), np.float32)
    slab_a[0:2 * F + 1] = w_ih_aug
    slab_a[offs_a["w_hh"]:offs_a["w_hh"] + H2] = w_hh_m
    slab_a[offs_a["w_qkv"]:offs_a["w_qkv"] + ENC_OUT] = w_qkv
    v0 = offs_a["vec"]
    slab_a[v0 + 0] = b_qkv
    slab_a[v0 + 1, 0:2 * ENC_OUT] = t_enc
    slab_a[v0 + 2, 0:ENC_OUT] = np_(raw["bo"])
    slab_a[v0 + 3, 0:OUT_DIM] = np_(raw["ln_gamma"])
    slab_a[v0 + 4, 0:OUT_DIM] = np_(raw["ln_beta"])
    slab_a[v0 + 5, 0:OUT_DIM] = np_(raw["b_fin"])

    # ---- slab B: bf16, width 128, larger feed-forward weights ----
    offs_b = {"w_lin": 0, "head": T * H2, "wo": T * H2 + ENC_OUT,
              "w_fin": T * H2 + 2 * ENC_OUT}
    rows_b = offs_b["w_fin"] + OUT_DIM
    slab_b = np.zeros((rows_b, OUT_DIM), np.float32)
    slab_b[offs_b["w_lin"]:offs_b["w_lin"] + T * H2] = w_lin_m
    slab_b[offs_b["head"]:offs_b["head"] + ENC_OUT, 0:ENC_OUT] = head_blk
    slab_b[offs_b["wo"]:offs_b["wo"] + ENC_OUT, 0:ENC_OUT] = np_(raw["wo"]).T
    slab_b[offs_b["w_fin"]:offs_b["w_fin"] + OUT_DIM] = np_(raw["w_fin"]).T

    return dict(slab_a=jnp.asarray(slab_a),
                slab_b=jnp.asarray(slab_b, dtype=jnp.bfloat16),
                offs_a=offs_a, offs_b=offs_b)


# =============================================================================
# Pure-JAX reference (mirrors the PyTorch forward, eval mode) for validation
# =============================================================================
def _ref_encoder(x, p, T):
    N = x.shape[0]
    h = jnp.zeros((N, HIDDEN)); c = jnp.zeros((N, HIDDEN)); hs = []
    for t in range(T):
        z = x[:, t, :] @ p["w_ih"].T + h @ p["w_hh"].T + p["b_ih"] + p["b_hh"]
        i = jax.nn.sigmoid(z[:, :32]); f = jax.nn.sigmoid(z[:, 32:64])
        g = jnp.tanh(z[:, 64:96]); o = jax.nn.sigmoid(z[:, 96:128])
        c = f * c + i * g; h = o * jnp.tanh(c); hs.append(h)
    hseq = jnp.stack(hs, axis=1)
    hseq = jnp.where(hseq > 0, hseq, 0.1 * hseq)
    y = hseq.reshape(N, T * HIDDEN) @ p["w_lin"].T + p["b_lin"]
    return ((y - p["bn_mean"]) / jnp.sqrt(p["bn_var"] + BN_EPS)
            * p["bn_gamma"] + p["bn_beta"])


def reference_forward(agent_hist, objects_hist, raw):
    B, NOBJ, T, F = objects_hist.shape
    af = _ref_encoder(agent_hist, raw["agent_enc"], T)
    of = _ref_encoder(objects_hist.reshape(B * NOBJ, T, F),
                      raw["object_enc"], T).reshape(B, NOBJ, ENC_OUT)
    allf = jnp.concatenate([af[:, None, :], of], axis=1)
    relu = jax.nn.relu
    q = relu(allf @ raw["wq"].T + raw["bq"])
    k = relu(allf @ raw["wk"].T + raw["bk"])
    v = relu(allf @ raw["wv"].T + raw["bv"])
    S = allf.shape[1]
    split = lambda a: a.reshape(B, S, HEADS, HEAD_DIM).transpose(0, 2, 1, 3)
    qh, kh, vh = split(q), split(k), split(v)
    scores = jnp.einsum('bhqd,bhkd->bhqk', qh, kh) / jnp.sqrt(1.0 * HEAD_DIM)
    p = jax.nn.softmax(scores, axis=-1)
    y = jnp.einsum('bhqk,bhkd->bhqd', p, vh).transpose(0, 2, 1, 3).reshape(B, S, ENC_OUT)
    att = relu(y @ raw["wo"].T + raw["bo"])
    feat = jnp.concatenate([af, att[:, 0, :]], axis=-1)
    mean = feat.mean(-1, keepdims=True)
    var = ((feat - mean) ** 2).mean(-1, keepdims=True)
    normed = (feat - mean) / jnp.sqrt(var + LN_EPS) * raw["ln_gamma"] + raw["ln_beta"]
    z = normed @ raw["w_fin"].T + raw["b_fin"]
    return jnp.where(z > 0, z, 0.3 * z)


if __name__ == "__main__":
    B, NOBJ, T, F = 2, 3, 8, 4
    key = jax.random.PRNGKey(0)
    k_params, k_agent, k_obj = jax.random.split(key, 3)

    raw = init_raw_params(k_params, n_features=F, trajectory_length=T)
    params = prep_params(raw, n_features=F, trajectory_length=T)

    agent_hist = jax.random.normal(k_agent, (B, T, F), jnp.float32)
    objects_hist = jax.random.normal(k_obj, (B, NOBJ, T, F), jnp.float32)

    out = trajectory_attention_encoder(agent_hist, objects_hist, params)
    out = jax.block_until_ready(out)

    assert out.shape == (B, OUT_DIM), out.shape
    assert bool(jnp.all(jnp.isfinite(out)))

    ref = reference_forward(agent_hist, objects_hist, raw)
    np.testing.assert_allclose(np.asarray(out), np.asarray(ref),
                               rtol=5e-2, atol=5e-2)
    print("KERNEL_OK")
</pallas_src>

<mosaic_0001>
module attributes {stable_mosaic.version = 11 : i64} {
  func.func @kernel(%arg0: memref<64x9xf32, #tpu.memory_space<vmem>>, %arg1: memref<152x256xf32, #tpu.memory_space<vmem>>, %arg2: memref<768x128xbf16, #tpu.memory_space<vmem>>, %arg3: memref<2x128xf32, #tpu.memory_space<vmem>>) attributes {dimension_semantics = [], scalar_prefetch = 0 : i64, scratch_operands = 0 : i64, tpu.core_type = #tpu.core_type<tc>} {
    %c0 = arith.constant 0 : index
    %c0_0 = arith.constant 0 : index
    %0 = vector.load %arg1[%c0, %c0_0] : memref<152x256xf32, #tpu.memory_space<vmem>>, vector<9x256xf32>
    %c16 = arith.constant 16 : index
    %c0_1 = arith.constant 0 : index
    %1 = vector.load %arg1[%c16, %c0_1] : memref<152x256xf32, #tpu.memory_space<vmem>>, vector<64x256xf32>
    %c80 = arith.constant 80 : index
    %c0_2 = arith.constant 0 : index
    %2 = vector.load %arg1[%c80, %c0_2] : memref<152x256xf32, #tpu.memory_space<vmem>>, vector<64x256xf32>
    %c144 = arith.constant 144 : index
    %c0_3 = arith.constant 0 : index
    %3 = vector.load %arg1[%c144, %c0_3] : memref<152x256xf32, #tpu.memory_space<vmem>>, vector<8x256xf32>
    %4 = vector.extract_strided_slice %3 {offsets = [0, 0], sizes = [1, 256], strides = [1, 1]} : vector<8x256xf32> to vector<1x256xf32>
    %5 = vector.extract_strided_slice %3 {offsets = [1, 0], sizes = [1, 128], strides = [1, 1]} : vector<8x256xf32> to vector<1x128xf32>
    %6 = vector.extract_strided_slice %3 {offsets = [2, 0], sizes = [1, 64], strides = [1, 1]} : vector<8x256xf32> to vector<1x64xf32>
    %7 = vector.extract_strided_slice %3 {offsets = [3, 0], sizes = [1, 128], strides = [1, 1]} : vector<8x256xf32> to vector<1x128xf32>
    %8 = vector.extract_strided_slice %3 {offsets = [4, 0], sizes = [1, 128], strides = [1, 1]} : vector<8x256xf32> to vector<1x128xf32>
    %9 = vector.extract_strided_slice %3 {offsets = [5, 0], sizes = [1, 128], strides = [1, 1]} : vector<8x256xf32> to vector<1x128xf32>
    %c0_4 = arith.constant 0 : index
    %c0_5 = arith.constant 0 : index
    %10 = vector.load %arg2[%c0_4, %c0_5] : memref<768x128xbf16, #tpu.memory_space<vmem>>, vector<512x128xbf16>
    %c512 = arith.constant 512 : index
    %c0_6 = arith.constant 0 : index
    %11 = vector.load %arg2[%c512, %c0_6] : memref<768x128xbf16, #tpu.memory_space<vmem>>, vector<64x64xbf16>
    %c576 = arith.constant 576 : index
    %c0_7 = arith.constant 0 : index
    %12 = vector.load %arg2[%c576, %c0_7] : memref<768x128xbf16, #tpu.memory_space<vmem>>, vector<64x64xbf16>
    %c640 = arith.constant 640 : index
    %c0_8 = arith.constant 0 : index
    %13 = vector.load %arg2[%c640, %c0_8] : memref<768x128xbf16, #tpu.memory_space<vmem>>, vector<128x128xbf16>
    %c0_9 = arith.constant 0 : index
    %c0_10 = arith.constant 0 : index
    %14 = vector.load %arg0[%c0_9, %c0_10] : memref<64x9xf32, #tpu.memory_space<vmem>>, vector<64x9xf32>
    %cst = arith.constant dense<0.000000e+00> : vector<64x256xf32>
    %15 = tpu.matmul %14, %0, %cst {dimension_numbers = #tpu.dot_dimension_numbers<[1], [0], [0], [1], [0, 0, 1, 1], [], []>} : vector<64x9xf32>, vector<9x256xf32>, vector<64x256xf32> -> vector<64x256xf32>
    %cst_11 = arith.constant 0.000000e+00 : f32
    %16 = vector.broadcast %cst_11 : f32 to vector<8x64xf32>
    %cst_12 = arith.constant 0.000000e+00 : f32
    %17 = vector.broadcast %cst_12 : f32 to vector<8x64xf32>
    %18 = vector.extract_strided_slice %15 {offsets = [0, 0], sizes = [8, 256], strides = [1, 1]} : vector<64x256xf32> to vector<8x256xf32>
    %cst_13 = arith.constant dense<0.000000e+00> : vector<8x256xf32>
    %19 = tpu.matmul %16, %1, %cst_13 {dimension_numbers = #tpu.dot_dimension_numbers<[1], [0], [0], [1], [0, 0, 1, 1], [], []>} : vector<8x64xf32>, vector<64x256xf32>, vector<8x256xf32> -> vector<8x256xf32>
    %20 = arith.addf %18, %19 : vector<8x256xf32>
    %21 = vector.extract_strided_slice %20 {offsets = [0, 0], sizes = [8, 192], strides = [1, 1]} : vector<8x256xf32> to vector<8x192xf32>
    %22 = arith.negf %21 : vector<8x192xf32>
    %23 = math.exp %22 : vector<8x192xf32>
    %cst_14 = arith.constant 1.000000e+00 : f32
    %24 = vector.broadcast %cst_14 : f32 to vector<8x192xf32>
    %25 = arith.addf %24, %23 : vector<8x192xf32>
    %26 = arith.divf %24, %25 : vector<8x192xf32>
    %27 = vector.extract_strided_slice %20 {offsets = [0, 192], sizes = [8, 64], strides = [1, 1]} : vector<8x256xf32> to vector<8x64xf32>
    %28 = math.tanh %27 : vector<8x64xf32>
    %29 = vector.extract_strided_slice %26 {offsets = [0, 64], sizes = [8, 64], strides = [1, 1]} : vector<8x192xf32> to vector<8x64xf32>
    %30 = arith.mulf %29, %17 : vector<8x64xf32>
    %31 = vector.extract_strided_slice %26 {offsets = [0, 0], sizes = [8, 64], strides = [1, 1]} : vector<8x192xf32> to vector<8x64xf32>
    %32 = arith.mulf %31, %28 : vector<8x64xf32>
    %33 = arith.addf %30, %32 : vector<8x64xf32>
    %34 = vector.extract_strided_slice %26 {offsets = [0, 128], sizes = [8, 64], strides = [1, 1]} : vector<8x192xf32> to vector<8x64xf32>
    %35 = math.tanh %33 : vector<8x64xf32>
    %36 = arith.mulf %34, %35 : vector<8x64xf32>
    %37 = vector.extract_strided_slice %15 {offsets = [8, 0], sizes = [8, 256], strides = [1, 1]} : vector<64x256xf32> to vector<8x256xf32>
    %cst_15 = arith.constant dense<0.000000e+00> : vector<8x256xf32>
    %38 = tpu.matmul %36, %1, %cst_15 {dimension_numbers = #tpu.dot_dimension_numbers<[1], [0], [0], [1], [0, 0, 1, 1], [], []>} : vector<8x64xf32>, vector<64x256xf32>, vector<8x256xf32> -> vector<8x256xf32>
    %39 = arith.addf %37, %38 : vector<8x256xf32>
    %40 = vector.extract_strided_slice %39 {offsets = [0, 0], sizes = [8, 192], strides = [1, 1]} : vector<8x256xf32> to vector<8x192xf32>
    %41 = arith.negf %40 : vector<8x192xf32>
    %42 = math.exp %41 : vector<8x192xf32>
    %cst_16 = arith.constant 1.000000e+00 : f32
    %43 = vector.broadcast %cst_16 : f32 to vector<8x192xf32>
    %44 = arith.addf %43, %42 : vector<8x192xf32>
    %45 = arith.divf %43, %44 : vector<8x192xf32>
    %46 = vector.extract_strided_slice %39 {offsets = [0, 192], sizes = [8, 64], strides = [1, 1]} : vector<8x256xf32> to vector<8x64xf32>
    %47 = math.tanh %46 : vector<8x64xf32>
    %48 = vector.extract_strided_slice %45 {offsets = [0, 64], sizes = [8, 64], strides = [1, 1]} : vector<8x192xf32> to vector<8x64xf32>
    %49 = arith.mulf %48, %33 : vector<8x64xf32>
    %50 = vector.extract_strided_slice %45 {offsets = [0, 0], sizes = [8, 64], strides = [1, 1]} : vector<8x192xf32> to vector<8x64xf32>
    %51 = arith.mulf %50, %47 : vector<8x64xf32>
    %52 = arith.addf %49, %51 : vector<8x64xf32>
    %53 = vector.extract_strided_slice %45 {offsets = [0, 128], sizes = [8, 64], strides = [1, 1]} : vector<8x192xf32> to vector<8x64xf32>
    %54 = math.tanh %52 : vector<8x64xf32>
    %55 = arith.mulf %53, %54 : vector<8x64xf32>
    %56 = vector.extract_strided_slice %15 {offsets = [16, 0], sizes = [8, 256], strides = [1, 1]} : vector<64x256xf32> to vector<8x256xf32>
    %cst_17 = arith.constant dense<0.000000e+00> : vector<8x256xf32>
    %57 = tpu.matmul %55, %1, %cst_17 {dimension_numbers = #tpu.dot_dimension_numbers<[1], [0], [0], [1], [0, 0, 1, 1], [], []>} : vector<8x64xf32>, vector<64x256xf32>, vector<8x256xf32> -> vector<8x256xf32>
    %58 = arith.addf %56, %57 : vector<8x256xf32>
    %59 = vector.extract_strided_slice %58 {offsets = [0, 0], sizes = [8, 192], strides = [1, 1]} : vector<8x256xf32> to vector<8x192xf32>
    %60 = arith.negf %59 : vector<8x192xf32>
    %61 = math.exp %60 : vector<8x192xf32>
    %cst_18 = arith.constant 1.000000e+00 : f32
    %62 = vector.broadcast %cst_18 : f32 to vector<8x192xf32>
    %63 = arith.addf %62, %61 : vector<8x192xf32>
    %64 = arith.divf %62, %63 : vector<8x192xf32>
    %65 = vector.extract_strided_slice %58 {offsets = [0, 192], sizes = [8, 64], strides = [1, 1]} : vector<8x256xf32> to vector<8x64xf32>
    %66 = math.tanh %65 : vector<8x64xf32>
    %67 = vector.extract_strided_slice %64 {offsets = [0, 64], sizes = [8, 64], strides = [1, 1]} : vector<8x192xf32> to vector<8x64xf32>
    %68 = arith.mulf %67, %52 : vector<8x64xf32>
    %69 = vector.extract_strided_slice %64 {offsets = [0, 0], sizes = [8, 64], strides = [1, 1]} : vector<8x192xf32> to vector<8x64xf32>
    %70 = arith.mulf %69, %66 : vector<8x64xf32>
    %71 = arith.addf %68, %70 : vector<8x64xf32>
    %72 = vector.extract_strided_slice %64 {offsets = [0, 128], sizes = [8, 64], strides = [1, 1]} : vector<8x192xf32> to vector<8x64xf32>
    %73 = math.tanh %71 : vector<8x64xf32>
    %74 = arith.mulf %72, %73 : vector<8x64xf32>
    %75 = vector.extract_strided_slice %15 {offsets = [24, 0], sizes = [8, 256], strides = [1, 1]} : vector<64x256xf32> to vector<8x256xf32>
    %cst_19 = arith.constant dense<0.000000e+00> : vector<8x256xf32>
    %76 = tpu.matmul %74, %1, %cst_19 {dimension_numbers = #tpu.dot_dimension_numbers<[1], [0], [0], [1], [0, 0, 1, 1], [], []>} : vector<8x64xf32>, vector<64x256xf32>, vector<8x256xf32> -> vector<8x256xf32>
    %77 = arith.addf %75, %76 : vector<8x256xf32>
    %78 = vector.extract_strided_slice %77 {offsets = [0, 0], sizes = [8, 192], strides = [1, 1]} : vector<8x256xf32> to vector<8x192xf32>
    %79 = arith.negf %78 : vector<8x192xf32>
    %80 = math.exp %79 : vector<8x192xf32>
    %cst_20 = arith.constant 1.000000e+00 : f32
    %81 = vector.broadcast %cst_20 : f32 to vector<8x192xf32>
    %82 = arith.addf %81, %80 : vector<8x192xf32>
    %83 = arith.divf %81, %82 : vector<8x192xf32>
    %84 = vector.extract_strided_slice %77 {offsets = [0, 192], sizes = [8, 64], strides = [1, 1]} : vector<8x256xf32> to vector<8x64xf32>
    %85 = math.tanh %84 : vector<8x64xf32>
    %86 = vector.extract_strided_slice %83 {offsets = [0, 64], sizes = [8, 64], strides = [1, 1]} : vector<8x192xf32> to vector<8x64xf32>
    %87 = arith.mulf %86, %71 : vector<8x64xf32>
    %88 = vector.extract_strided_slice %83 {offsets = [0, 0], sizes = [8, 64], strides = [1, 1]} : vector<8x192xf32> to vector<8x64xf32>
    %89 = arith.mulf %88, %85 : vector<8x64xf32>
    %90 = arith.addf %87, %89 : vector<8x64xf32>
    %91 = vector.extract_strided_slice %83 {offsets = [0, 128], sizes = [8, 64], strides = [1, 1]} : vector<8x192xf32> to vector<8x64xf32>
    %92 = math.tanh %90 : vector<8x64xf32>
    %93 = arith.mulf %91, %92 : vector<8x64xf32>
    %94 = vector.extract_strided_slice %15 {offsets = [32, 0], sizes = [8, 256], strides = [1, 1]} : vector<64x256xf32> to vector<8x256xf32>
    %cst_21 = arith.constant dense<0.000000e+00> : vector<8x256xf32>
    %95 = tpu.matmul %93, %1, %cst_21 {dimension_numbers = #tpu.dot_dimension_numbers<[1], [0], [0], [1], [0, 0, 1, 1], [], []>} : vector<8x64xf32>, vector<64x256xf32>, vector<8x256xf32> -> vector<8x256xf32>
    %96 = arith.addf %94, %95 : vector<8x256xf32>
    %97 = vector.extract_strided_slice %96 {offsets = [0, 0], sizes = [8, 192], strides = [1, 1]} : vector<8x256xf32> to vector<8x192xf32>
    %98 = arith.negf %97 : vector<8x192xf32>
    %99 = math.exp %98 : vector<8x192xf32>
    %cst_22 = arith.constant 1.000000e+00 : f32
    %100 = vector.broadcast %cst_22 : f32 to vector<8x192xf32>
    %101 = arith.addf %100, %99 : vector<8x192xf32>
    %102 = arith.divf %100, %101 : vector<8x192xf32>
    %103 = vector.extract_strided_slice %96 {offsets = [0, 192], sizes = [8, 64], strides = [1, 1]} : vector<8x256xf32> to vector<8x64xf32>
    %104 = math.tanh %103 : vector<8x64xf32>
    %105 = vector.extract_strided_slice %102 {offsets = [0, 64], sizes = [8, 64], strides = [1, 1]} : vector<8x192xf32> to vector<8x64xf32>
    %106 = arith.mulf %105, %90 : vector<8x64xf32>
    %107 = vector.extract_strided_slice %102 {offsets = [0, 0], sizes = [8, 64], strides = [1, 1]} : vector<8x192xf32> to vector<8x64xf32>
    %108 = arith.mulf %107, %104 : vector<8x64xf32>
    %109 = arith.addf %106, %108 : vector<8x64xf32>
    %110 = vector.extract_strided_slice %102 {offsets = [0, 128], sizes = [8, 64], strides = [1, 1]} : vector<8x192xf32> to vector<8x64xf32>
    %111 = math.tanh %109 : vector<8x64xf32>
    %112 = arith.mulf %110, %111 : vector<8x64xf32>
    %113 = vector.extract_strided_slice %15 {offsets = [40, 0], sizes = [8, 256], strides = [1, 1]} : vector<64x256xf32> to vector<8x256xf32>
    %cst_23 = arith.constant dense<0.000000e+00> : vector<8x256xf32>
    %114 = tpu.matmul %112, %1, %cst_23 {dimension_numbers = #tpu.dot_dimension_numbers<[1], [0], [0], [1], [0, 0, 1, 1], [], []>} : vector<8x64xf32>, vector<64x256xf32>, vector<8x256xf32> -> vector<8x256xf32>
    %115 = arith.addf %113, %114 : vector<8x256xf32>
    %116 = vector.extract_strided_slice %115 {offsets = [0, 0], sizes = [8, 192], strides = [1, 1]} : vector<8x256xf32> to vector<8x192xf32>
    %117 = arith.negf %116 : vector<8x192xf32>
    %118 = math.exp %117 : vector<8x192xf32>
    %cst_24 = arith.constant 1.000000e+00 : f32
    %119 = vector.broadcast %cst_24 : f32 to vector<8x192xf32>
    %120 = arith.addf %119, %118 : vector<8x192xf32>
    %121 = arith.divf %119, %120 : vector<8x192xf32>
    %122 = vector.extract_strided_slice %115 {offsets = [0, 192], sizes = [8, 64], strides = [1, 1]} : vector<8x256xf32> to vector<8x64xf32>
    %123 = math.tanh %122 : vector<8x64xf32>
    %124 = vector.extract_strided_slice %121 {offsets = [0, 64], sizes = [8, 64], strides = [1, 1]} : vector<8x192xf32> to vector<8x64xf32>
    %125 = arith.mulf %124, %109 : vector<8x64xf32>
    %126 = vector.extract_strided_slice %121 {offsets = [0, 0], sizes = [8, 64], strides = [1, 1]} : vector<8x192xf32> to vector<8x64xf32>
    %127 = arith.mulf %126, %123 : vector<8x64xf32>
    %128 = arith.addf %125, %127 : vector<8x64xf32>
    %129 = vector.extract_strided_slice %121 {offsets = [0, 128], sizes = [8, 64], strides = [1, 1]} : vector<8x192xf32> to vector<8x64xf32>
    %130 = math.tanh %128 : vector<8x64xf32>
    %131 = arith.mulf %129, %130 : vector<8x64xf32>
    %132 = vector.extract_strided_slice %15 {offsets = [48, 0], sizes = [8, 256], strides = [1, 1]} : vector<64x256xf32> to vector<8x256xf32>
    %cst_25 = arith.constant dense<0.000000e+00> : vector<8x256xf32>
    %133 = tpu.matmul %131, %1, %cst_25 {dimension_numbers = #tpu.dot_dimension_numbers<[1], [0], [0], [1], [0, 0, 1, 1], [], []>} : vector<8x64xf32>, vector<64x256xf32>, vector<8x256xf32> -> vector<8x256xf32>
    %134 = arith.addf %132, %133 : vector<8x256xf32>
    %135 = vector.extract_strided_slice %134 {offsets = [0, 0], sizes = [8, 192], strides = [1, 1]} : vector<8x256xf32> to vector<8x192xf32>
    %136 = arith.negf %135 : vector<8x192xf32>
    %137 = math.exp %136 : vector<8x192xf32>
    %cst_26 = arith.constant 1.000000e+00 : f32
    %138 = vector.broadcast %cst_26 : f32 to vector<8x192xf32>
    %139 = arith.addf %138, %137 : vector<8x192xf32>
    %140 = arith.divf %138, %139 : vector<8x192xf32>
    %141 = vector.extract_strided_slice %134 {offsets = [0, 192], sizes = [8, 64], strides = [1, 1]} : vector<8x256xf32> to vector<8x64xf32>
    %142 = math.tanh %141 : vector<8x64xf32>
    %143 = vector.extract_strided_slice %140 {offsets = [0, 64], sizes = [8, 64], strides = [1, 1]} : vector<8x192xf32> to vector<8x64xf32>
    %144 = arith.mulf %143, %128 : vector<8x64xf32>
    %145 = vector.extract_strided_slice %140 {offsets = [0, 0], sizes = [8, 64], strides = [1, 1]} : vector<8x192xf32> to vector<8x64xf32>
    %146 = arith.mulf %145, %142 : vector<8x64xf32>
    %147 = arith.addf %144, %146 : vector<8x64xf32>
    %148 = vector.extract_strided_slice %140 {offsets = [0, 128], sizes = [8, 64], strides = [1, 1]} : vector<8x192xf32> to vector<8x64xf32>
    %149 = math.tanh %147 : vector<8x64xf32>
    %150 = arith.mulf %148, %149 : vector<8x64xf32>
    %151 = vector.extract_strided_slice %15 {offsets = [56, 0], sizes = [8, 256], strides = [1, 1]} : vector<64x256xf32> to vector<8x256xf32>
    %cst_27 = arith.constant dense<0.000000e+00> : vector<8x256xf32>
    %152 = tpu.matmul %150, %1, %cst_27 {dimension_numbers = #tpu.dot_dimension_numbers<[1], [0], [0], [1], [0, 0, 1, 1], [], []>} : vector<8x64xf32>, vector<64x256xf32>, vector<8x256xf32> -> vector<8x256xf32>
    %153 = arith.addf %151, %152 : vector<8x256xf32>
    %154 = vector.extract_strided_slice %153 {offsets = [0, 0], sizes = [8, 192], strides = [1, 1]} : vector<8x256xf32> to vector<8x192xf32>
    %155 = arith.negf %154 : vector<8x192xf32>
    %156 = math.exp %155 : vector<8x192xf32>
    %cst_28 = arith.constant 1.000000e+00 : f32
    %157 = vector.broadcast %cst_28 : f32 to vector<8x192xf32>
    %158 = arith.addf %157, %156 : vector<8x192xf32>
    %159 = arith.divf %157, %158 : vector<8x192xf32>
    %160 = vector.extract_strided_slice %153 {offsets = [0, 192], sizes = [8, 64], strides = [1, 1]} : vector<8x256xf32> to vector<8x64xf32>
    %161 = math.tanh %160 : vector<8x64xf32>
    %162 = vector.extract_strided_slice %159 {offsets = [0, 64], sizes = [8, 64], strides = [1, 1]} : vector<8x192xf32> to vector<8x64xf32>
    %163 = arith.mulf %162, %147 : vector<8x64xf32>
    %164 = vector.extract_strided_slice %159 {offsets = [0, 0], sizes = [8, 64], strides = [1, 1]} : vector<8x192xf32> to vector<8x64xf32>
    %165 = arith.mulf %164, %161 : vector<8x64xf32>
    %166 = arith.addf %163, %165 : vector<8x64xf32>
    %167 = vector.extract_strided_slice %159 {offsets = [0, 128], sizes = [8, 64], strides = [1, 1]} : vector<8x192xf32> to vector<8x64xf32>
    %168 = math.tanh %166 : vector<8x64xf32>
    %169 = arith.mulf %167, %168 : vector<8x64xf32>
    %170 = tpu.concatenate %36, %55, %74, %93, %112, %131, %150, %169 in 1 : vector<8x64xf32>, vector<8x64xf32>, vector<8x64xf32>, vector<8x64xf32>, vector<8x64xf32>, vector<8x64xf32>, vector<8x64xf32>, vector<8x64xf32> -> vector<8x512xf32>
    %cst_29 = arith.constant 0.000000e+00 : f32
    %171 = vector.broadcast %cst_29 : f32 to vector<8x512xf32>
    %172 = arith.cmpf ogt, %170, %171 : vector<8x512xf32>
    %cst_30 = arith.constant 1.000000e-01 : f32
    %173 = vector.broadcast %cst_30 : f32 to vector<8x512xf32>
    %174 = arith.mulf %173, %170 : vector<8x512xf32>
    %175 = arith.select %172, %170, %174 : vector<8x512xi1>, vector<8x512xf32>
    %176 = arith.truncf %175 : vector<8x512xf32> to vector<8x512xbf16>
    %cst_31 = arith.constant dense<0.000000e+00> : vector<8x128xf32>
    %177 = tpu.matmul %176, %10, %cst_31 {dimension_numbers = #tpu.dot_dimension_numbers<[1], [0], [0], [1], [0, 0, 1, 1], [], []>} : vector<8x512xbf16>, vector<512x128xbf16>, vector<8x128xf32> -> vector<8x128xf32>
    %178 = vector.broadcast %5 : vector<1x128xf32> to vector<8x128xf32>
    %179 = arith.addf %177, %178 : vector<8x128xf32>
    %180 = vector.extract_strided_slice %179 {offsets = [0, 0], sizes = [2, 64], strides = [1, 1]} : vector<8x128xf32> to vector<2x64xf32>
    %181 = vector.extract_strided_slice %179 {offsets = [0, 64], sizes = [6, 64], strides = [1, 1]} : vector<8x128xf32> to vector<6x64xf32>
    %182 = vector.shape_cast %180 : vector<2x64xf32> to vector<2x1x64xf32>
    %183 = vector.shape_cast %181 : vector<6x64xf32> to vector<2x3x64xf32>
    %184 = tpu.concatenate %182, %183 in 1 : vector<2x1x64xf32>, vector<2x3x64xf32> -> vector<2x4x64xf32>
    %185 = vector.shape_cast %184 : vector<2x4x64xf32> to vector<8x64xf32>
    %cst_32 = arith.constant dense<0.000000e+00> : vector<8x256xf32>
    %186 = tpu.matmul %185, %2, %cst_32 {dimension_numbers = #tpu.dot_dimension_numbers<[1], [0], [0], [1], [0, 0, 1, 1], [], []>} : vector<8x64xf32>, vector<64x256xf32>, vector<8x256xf32> -> vector<8x256xf32>
    %187 = vector.broadcast %4 : vector<1x256xf32> to vector<8x256xf32>
    %188 = arith.addf %186, %187 : vector<8x256xf32>
    %cst_33 = arith.constant 0.000000e+00 : f32
    %189 = vector.broadcast %cst_33 : f32 to vector<8x256xf32>
    %190 = arith.maximumf %188, %189 : vector<8x256xf32>
    %191 = vector.extract_strided_slice %190 {offsets = [0, 64], sizes = [8, 64], strides = [1, 1]} : vector<8x256xf32> to vector<8x64xf32>
    %192 = vector.shape_cast %191 : vector<8x64xf32> to vector<2x4x64xf32>
    %193 = vector.extract_strided_slice %190 {offsets = [0, 128], sizes = [8, 64], strides = [1, 1]} : vector<8x256xf32> to vector<8x64xf32>
    %194 = vector.shape_cast %193 : vector<8x64xf32> to vector<2x4x64xf32>
    %195 = vector.extract_strided_slice %190 {offsets = [0, 0], sizes = [8, 64], strides = [1, 1]} : vector<8x256xf32> to vector<8x64xf32>
    %196 = vector.shape_cast %195 : vector<8x64xf32> to vector<2x4x64xf32>
    %197 = vector.extract_strided_slice %196 {offsets = [0, 0, 0], sizes = [2, 1, 64], strides = [1, 1, 1]} : vector<2x4x64xf32> to vector<2x1x64xf32>
    %198 = vector.broadcast %197 : vector<2x1x64xf32> to vector<2x4x64xf32>
    %199 = arith.mulf %198, %192 : vector<2x4x64xf32>
    %200 = vector.shape_cast %199 : vector<2x4x64xf32> to vector<8x64xf32>
    %201 = arith.truncf %200 : vector<8x64xf32> to vector<8x64xbf16>
    %cst_34 = arith.constant dense<0.000000e+00> : vector<8x64xf32>
    %202 = tpu.matmul %201, %11, %cst_34 {dimension_numbers = #tpu.dot_dimension_numbers<[1], [0], [0], [1], [0, 0, 1, 1], [], []>} : vector<8x64xbf16>, vector<64x64xbf16>, vector<8x64xf32> -> vector<8x64xf32>
    %203 = vector.shape_cast %202 : vector<8x64xf32> to vector<2x4x64xf32>
    %cst_35 = arith.constant dense<0xFF800000> : vector<2x64xf32>
    %204 = vector.multi_reduction <maximumf>, %203, %cst_35 [1] : vector<2x4x64xf32> to vector<2x64xf32>
    %205 = vector.shape_cast %204 : vector<2x64xf32> to vector<2x1x64xf32>
    %206 = vector.broadcast %205 : vector<2x1x64xf32> to vector<2x4x64xf32>
    %207 = arith.subf %203, %206 : vector<2x4x64xf32>
    %208 = math.exp %207 : vector<2x4x64xf32>
    %209 = arith.mulf %208, %194 : vector<2x4x64xf32>
    %cst_36 = arith.constant dense<0.000000e+00> : vector<2x64xf32>
    %210 = vector.multi_reduction <add>, %209, %cst_36 [1] : vector<2x4x64xf32> to vector<2x64xf32>
    %cst_37 = arith.constant dense<0.000000e+00> : vector<2x64xf32>
    %211 = vector.multi_reduction <add>, %208, %cst_37 [1] : vector<2x4x64xf32> to vector<2x64xf32>
    %212 = tpu.reciprocal %211 {approx = true} : vector<2x64xf32> -> vector<2x64xf32>
    %213 = arith.mulf %210, %212 : vector<2x64xf32>
    %214 = arith.truncf %213 : vector<2x64xf32> to vector<2x64xbf16>
    %cst_38 = arith.constant dense<0.000000e+00> : vector<2x64xf32>
    %215 = tpu.matmul %214, %12, %cst_38 {dimension_numbers = #tpu.dot_dimension_numbers<[1], [0], [0], [1], [0, 0, 1, 1], [], []>} : vector<2x64xbf16>, vector<64x64xbf16>, vector<2x64xf32> -> vector<2x64xf32>
    %216 = vector.broadcast %6 : vector<1x64xf32> to vector<2x64xf32>
    %217 = arith.addf %215, %216 : vector<2x64xf32>
    %cst_39 = arith.constant 0.000000e+00 : f32
    %218 = vector.broadcast %cst_39 : f32 to vector<2x64xf32>
    %219 = arith.maximumf %217, %218 : vector<2x64xf32>
    %220 = tpu.concatenate %180, %219 in 1 : vector<2x64xf32>, vector<2x64xf32> -> vector<2x128xf32>
    %cst_40 = arith.constant dense<0.000000e+00> : vector<2xf32>
    %221 = vector.multi_reduction <add>, %220, %cst_40 [1] : vector<2x128xf32> to vector<2xf32>
    %222 = vector.shape_cast %221 : vector<2xf32> to vector<2x1xf32>
    %cst_41 = arith.constant 1.280000e+02 : f32
    %223 = vector.broadcast %cst_41 : f32 to vector<2x1xf32>
    %224 = arith.divf %222, %223 : vector<2x1xf32>
    %225 = vector.broadcast %224 : vector<2x1xf32> to vector<2x128xf32>
    %226 = arith.subf %220, %225 : vector<2x128xf32>
    %227 = arith.mulf %226, %226 : vector<2x128xf32>
    %cst_42 = arith.constant dense<0.000000e+00> : vector<2xf32>
    %228 = vector.multi_reduction <add>, %227, %cst_42 [1] : vector<2x128xf32> to vector<2xf32>
    %229 = vector.shape_cast %228 : vector<2xf32> to vector<2x1xf32>
    %cst_43 = arith.constant 1.280000e+02 : f32
    %230 = vector.broadcast %cst_43 : f32 to vector<2x1xf32>
    %231 = arith.divf %229, %230 : vector<2x1xf32>
    %232 = vector.broadcast %224 : vector<2x1xf32> to vector<2x128xf32>
    %233 = arith.subf %220, %232 : vector<2x128xf32>
    %cst_44 = arith.constant 9.99999974E-6 : f32
    %234 = vector.broadcast %cst_44 : f32 to vector<2x1xf32>
    %235 = arith.addf %231, %234 : vector<2x1xf32>
    %236 = math.rsqrt %235 : vector<2x1xf32>
    %237 = vector.broadcast %236 : vector<2x1xf32> to vector<2x128xf32>
    %238 = arith.mulf %233, %237 : vector<2x128xf32>
    %239 = vector.broadcast %7 : vector<1x128xf32> to vector<2x128xf32>
    %240 = arith.mulf %238, %239 : vector<2x128xf32>
    %241 = vector.broadcast %8 : vector<1x128xf32> to vector<2x128xf32>
    %242 = arith.addf %240, %241 : vector<2x128xf32>
    %243 = arith.truncf %242 : vector<2x128xf32> to vector<2x128xbf16>
    %cst_45 = arith.constant dense<0.000000e+00> : vector<2x128xf32>
    %244 = tpu.matmul %243, %13, %cst_45 {dimension_numbers = #tpu.dot_dimension_numbers<[1], [0], [0], [1], [0, 0, 1, 1], [], []>} : vector<2x128xbf16>, vector<128x128xbf16>, vector<2x128xf32> -> vector<2x128xf32>
    %245 = vector.broadcast %9 : vector<1x128xf32> to vector<2x128xf32>
    %246 = arith.addf %244, %245 : vector<2x128xf32>
    %cst_46 = arith.constant 0.000000e+00 : f32
    %247 = vector.broadcast %cst_46 : f32 to vector<2x128xf32>
    %248 = arith.cmpf ogt, %246, %247 : vector<2x128xf32>
    %cst_47 = arith.constant 3.000000e-01 : f32
    %249 = vector.broadcast %cst_47 : f32 to vector<2x128xf32>
    %250 = arith.mulf %249, %246 : vector<2x128xf32>
    %251 = arith.select %248, %246, %250 : vector<2x128xi1>, vector<2x128xf32>
    %c0_48 = arith.constant 0 : index
    %c0_49 = arith.constant 0 : index
    %252 = vector.load %arg3[%c0_48, %c0_49] : memref<2x128xf32, #tpu.memory_space<vmem>>, vector<2x128xf32>
    tpu.vector_store %arg3[%c0_48, %c0_49], %251 {strides = array<i32>} : memref<2x128xf32, #tpu.memory_space<vmem>>, vector<2x128xf32>,
    return
  }
}

</mosaic_0001>

<bundles_post_ra>
// kernel: tpu_custom_call.1
= control target key start
LH: loop header
LB: loop body
LE: loop exit
PB: predicated region body
PF: predicated region fallthrough
CT: control target
= control target key end

     0   :  { %8 = vsyncpa [#allocation3], 0  ;;  %s2987_s0 = inlined_call_operand.vmem [shape: f32[64,9], index: 0, kind: input, shape index: {}]   ;;  %s2988_s1 = inlined_call_operand.hbm [shape: f32[152,256], index: 1, kind: input, shape index: {}]   ;;  %s2989_s2 = inlined_call_operand.hbm [shape: bf16[768,128], index: 2, kind: input, shape index: {}]   ;;  %s2990_s3 = inlined_call_operand.hbm [shape: f32[2,128], index: 3, kind: output, shape index: {}]  }
   0x1   :  { %9 = vsyncpa [#allocation6], 0 }
   0x2   :  { %10 = vsyncpa [#allocation4], 0  ;;  %s2652_s12 = smov [#allocation2]   ;;  %s2580_s16 = scalar_lea.hbm %s2988_s1, 4864 }
   0x3   :  { %s18_s13 = sshll.u32 %s2652_s12, 4  ;;  %p2581_p0 = scmp.ne.s32.totalorder %s2988_s1, %s2580_s16  ;;  %s19_s13 = int_to_ptr.vmem [resolvable:$true] %s18_s13 }
   0x4   :  { %p2584_p1 = scmp.lt.u32.totalorder %s2580_s16, %s2988_s1 }
   0x6   :  { %p2586_p2 = pnand %p2584_p1, %p2581_p0 }
   0x8   :  { %2589 = shalt.err (!%p2586_p2)
}
   0x9   :  { %s2590_s21 = scalar_lea.vmem %s19_s13, 4864  ;;  %p2595_p4 = scmp.lt.s32.totalorder %s19_s13, %s19_s13 }
   0xa   :  { %p2591_p3 = scmp.ne.s32.totalorder %s19_s13, %s2590_s21  ;;  %p2596_p5 = scmp.lt.s32.totalorder %s2590_s21, %s2590_s21 }
   0xc   :  { %p2597_p6 = por %p2596_p5, %p2595_p4 }
   0xe   :  { %p2598_p7 = pnand %p2597_p6, %p2591_p3 }
  0x10   :  { %2601 = shalt.err (!%p2598_p7)
}
  0x11   :  { %s2653_s22 = smov 256   ;;  %s2654_s23 = smov 16  }
  0x12   :  { %24 = dma.hbm_to_vmem [thread:$0]  %s2988_s1, 4864, %s19_s13, [#allocation3], %s2653_s22, %s2653_s22, %s2654_s23  }
  0x13   :  { %s2655_s26 = smov [#allocation5]   ;;  %s2602_s30 = scalar_lea.hbm %s2989_s2, 6144 }
  0x14   :  { %s30_s27 = sshll.u32 %s2655_s26, 4  ;;  %p2603_p8 = scmp.ne.s32.totalorder %s2989_s2, %s2602_s30  ;;  %s31_s27 = int_to_ptr.vmem [resolvable:$true] %s30_s27 }
  0x15   :  { %p2606_p9 = scmp.lt.u32.totalorder %s2602_s30, %s2989_s2 }
  0x17   :  { %p2608_p10 = pnand %p2606_p9, %p2603_p8 }
  0x19   :  { %2611 = shalt.err (!%p2608_p10)
}
  0x1a   :  { %s2612_s8 = scalar_lea.vmem %s31_s27, 6144  ;;  %p2617_p12 = scmp.lt.s32.totalorder %s31_s27, %s31_s27 }
  0x1b   :  { %p2613_p11 = scmp.ne.s32.totalorder %s31_s27, %s2612_s8  ;;  %p2618_p13 = scmp.lt.s32.totalorder %s2612_s8, %s2612_s8 }
  0x1d   :  { %p2619_p0 = por %p2618_p13, %p2617_p12 }
  0x1f   :  { %p2620_p1 = pnand %p2619_p0, %p2613_p11 }
  0x21   :  { %2623 = shalt.err (!%p2620_p1)
}
  0x22   :  { %s2656_s1 = smov 64   ;;  %s2657_s9 = smov 4  }
  0x23   :  { %36 = dma.hbm_to_vmem [thread:$0]  %s2989_s2, 6144, %s31_s27, [#allocation6], %s2656_s1, %s2656_s1, %s2657_s9  }
  0x24   :  { %2646 = dma.done.wait [#allocation3], 4864  }
  0x25   :  { %2647 = vsyncadd [#allocation3], 4294962432 }
  0x26   :  { %2648 = dma.done.wait [#allocation6], 6144  }
  0x27   :  { %2649 = vsyncadd [#allocation6], 4294961152  ;;  %v2658_v0 = vmov 0.0   ;;  %vm211_vm0 = vcmask 1040384   ;;  %vm2659_vm1 = vmmov 1   ;;  %v45_v1 = vld [vmem:[#allocation2 + $0x8] sm:$0xff] }
  0x28   :  { %282 = vmatprep.mubr.f32.mxu0 %v2658_v0  ;;  %vm2250_vm2 = vmpackc.low %vm211_vm0, %vm2659_vm1  ;;  %v47_v2 = vld [vmem:[#allocation2 + $0x18] sm:$0x1]  ;;  %v44_v3 = vld [vmem:[#allocation2] sm:$0xff]  ;;  %vm186_vm3 = vcmask 72704   ;;  %vm331_vm4 = vcmask 523264   ;;  %vm2661_vm9 = vmmov 0  }
  0x29   :  { %v2249_v4 = vpack.c.bf16 %v47_v2, %v45_v1  ;;  %v46_v5 = vld [vmem:[#allocation2 + $0x10] sm:$0x1]  ;;  %v49_v6 = vld [vmem:[#allocation2 + $0x28] sm:$0xff]  ;;  %v51_v8 = vld [vmem:[#allocation2 + $0x38] sm:$0xff]  ;;  %vm1778_vm10 = vcmask 519168   ;;  %vm1843_vm11 = vcmask 1041409  }
  0x2a   :  { %v2252_v7 = vpack.c.bf16 %v46_v5, %v44_v3  ;;  %v48_v9 = vld [vmem:[#allocation2 + $0x20] sm:$0xff]  ;;  %v50_v10 = vld [vmem:[#allocation2 + $0x30] sm:$0xff]  ;;  %v2711_v11 = vpack.c.bf16 %v51_v8, %v49_v6  ;;  %v53_v12 = vld [vmem:[#allocation2 + $0x48] sm:$0xff]  ;;  %vm1919_vm12 = vcmask 1041408  }
  0x2b   :  { %2251 = vmatprep.subr.msk.bf16.mxu0 %vm2250_vm2, %v2249_v4  ;;  %v178_v13 = vld [vmem:[%s2987_s0] sm:$0xff]  ;;  %v2716_v14 = vpack.c.bf16 %v50_v10, %v48_v9  ;;  %v55_v15 = vld [vmem:[#allocation2 + $0x58] sm:$0xff]  ;;  %v54_v18 = vld [vmem:[#allocation2 + $0x50] sm:$0xff] }
  0x2c   :  { %2254 = vmatpush1.bf16.msk.msra.mxu0 %vm2250_vm2, %v2252_v7  ;;  %v2719_v16 = vpack.c.bf16 %v55_v15, %v53_v12  ;;  %v52_v17 = vld [vmem:[#allocation2 + $0x40] sm:$0xff]  ;;  %v57_v19 = vld [vmem:[#allocation2 + $0x68] sm:$0xff]  ;;  %v59_v20 = vld [vmem:[#allocation2 + $0x78] sm:$0xff] }
  0x2d   :  { %2256 = vmatprep.subr.bf16.mxu0 %v2711_v11  ;;  %v179_v21 = vld [vmem:[%s2987_s0 + $0x8] sm:$0xff]  ;;  %v2727_v22 = vpack.c.bf16 %v54_v18, %v52_v17  ;;  %v56_v23 = vld [vmem:[#allocation2 + $0x60] sm:$0xff]  ;;  %v58_v24 = vld [vmem:[#allocation2 + $0x70] sm:$0xff]  ;;  %v2730_v26 = vpack.c.bf16 %v59_v20, %v57_v19 }
  0x2e   :  { %v61_v25 = vld [vmem:[#allocation2 + $0x88] sm:$0xff]  ;;  %v63_v27 = vld [vmem:[#allocation2 + $0x98] sm:$0xff]  ;;  %v180_v28 = vld [vmem:[%s2987_s0 + $0x10] sm:$0xff]  ;;  %v2738_v31 = vpack.c.bf16 %v58_v24, %v56_v23 }
  0x2f   :  { %2059 = vmatmul.mubr.msk.f32.vlgmr.msra.gmra.mrb[0].mxu0 %vm186_vm3, %v178_v13  ;;  %v60_v29 = vld [vmem:[#allocation2 + $0x80] sm:$0xff]  ;;  %v62_v30 = vld [vmem:[#allocation2 + $0x90] sm:$0xff]  ;;  %v2741_v32 = vpack.c.bf16 %v63_v27, %v61_v25  ;;  %v181_v33 = vld [vmem:[%s2987_s0 + $0x18] sm:$0xff] }
  0x30   :  { %2258 = vmatpush1.bf16.msra.mxu0 %v2716_v14  ;;  %288 = vmatprep.mubr.f32.mxu0 %v2658_v0  ;;  %v2749_v34 = vpack.c.bf16 %v62_v30, %v60_v29  ;;  %v182_v35 = vld [vmem:[%s2987_s0 + $0x20] sm:$0xff]  ;;  %v183_v36 = vld [vmem:[%s2987_s0 + $0x28] sm:$0xff]  ;;  %v184_v37 = vld [vmem:[%s2987_s0 + $0x30] sm:$0xff] }
  0x31   :  { %2260 = vmatprep.subr.bf16.mxu0 %v2719_v16  ;;  %v185_v38 = vld [vmem:[%s2987_s0 + $0x38] sm:$0xff]  ;;  %s2662_s0 = smov [#allocation7]  }
  0x32   :  { %s2047_s27 = sshll.u32 %s2662_s0, 4  ;;  %s2048_s27 = int_to_ptr.vmem [resolvable:$true] %s2047_s27 }
  0x33   :  { %2060 = vmatmul.mubr.msk.f32.gmra.mrb[2].mxu0 %vm186_vm3, %v179_v21  ;;  %s2624_s28 = scalar_lea.vmem %s2048_s27, 32  ;;  %p2629_p3 = scmp.lt.s32.totalorder %s2048_s27, %s2048_s27 }
  0x34   :  { %294 = vmatprep.mubr.f32.mxu0 %v2658_v0  ;;  %2262 = vmatpush1.bf16.msra.mxu0 %v2727_v22  ;;  %p2625_p2 = scmp.ne.s32.totalorder %s2048_s27, %s2624_s28  ;;  %p2630_p4 = scmp.lt.s32.totalorder %s2624_s28, %s2624_s28 }
  0x35   :  { %2264 = vmatprep.subr.bf16.mxu0 %v2730_v26 }
  0x36   :  { %p2631_p5 = por %p2630_p4, %p2629_p3 }
  0x37   :  { %2061 = vmatmul.mubr.msk.f32.gmra.mrb[4].mxu0 %vm186_vm3, %v180_v28 }
  0x38   :  { %300 = vmatprep.mubr.f32.mxu0 %v2658_v0  ;;  %2266 = vmatpush1.bf16.msra.mxu0 %v2738_v31  ;;  %p2632_p6 = pnand %p2631_p5, %p2625_p2 }
  0x39   :  { %2268 = vmatprep.subr.bf16.mxu0 %v2741_v32 }
  0x3b   :  { %2062 = vmatmul.mubr.msk.f32.gmra.mrb[6].mxu0 %vm186_vm3, %v181_v33 }
  0x3c   :  { %306 = vmatprep.mubr.f32.mxu0 %v2658_v0  ;;  %2270 = vmatpush1.bf16.msra.mxu0 %v2749_v34 }
  0x3d   :  { %2272 = vmatprep.subr.bf16.mxu0 %v2711_v11 }
  0x3f   :  { %2063 = vmatmul.mubr.msk.f32.gmra.mrb[8].mxu0 %vm186_vm3, %v182_v35 }
  0x40   :  { %312 = vmatprep.mubr.f32.mxu0 %v2658_v0 }
  0x43   :  { %2064 = vmatmul.mubr.msk.f32.gmra.mrb[10].mxu0 %vm186_vm3, %v183_v36 }
  0x44   :  { %318 = vmatprep.mubr.f32.mxu0 %v2658_v0 }
  0x47   :  { %2065 = vmatmul.mubr.msk.f32.gmra.mrb[12].mxu0 %vm186_vm3, %v184_v37 }
  0x48   :  { %324 = vmatprep.mubr.f32.mxu0 %v2658_v0 }
  0x4b   :  { %2066 = vmatmul.mubr.msk.f32.gmra.mrb[14].mxu0 %vm186_vm3, %v185_v38 }
  0x4c   :  { %399 = vmatprep.mubr.f32.mxu0 %v2658_v0 }
  0x4f   :  { %400 = vmatmul.mubr.f32.vlgmr.msra.gmra.mrb[0].mxu0 %v2658_v0 }
  0x50   :  { %2274 = vmatpush1.bf16.msra.mxu0 %v2716_v14  ;;  %505 = vmatprep.mubr.f32.mxu0 %v2658_v0 }
  0x51   :  { %2276 = vmatprep.subr.bf16.mxu0 %v2719_v16 }
  0x54   :  { %2278 = vmatpush1.bf16.msra.mxu0 %v2727_v22 }
  0x55   :  { %2280 = vmatprep.subr.bf16.mxu0 %v2730_v26 }
  0x58   :  { %2282 = vmatpush1.bf16.msra.mxu0 %v2738_v31 }
  0x59   :  { %2284 = vmatprep.subr.bf16.mxu0 %v2741_v32 }
  0x5c   :  { %2286 = vmatpush1.bf16.msra.mxu0 %v2749_v34 }
  0x5d   :  { %2288 = vmatprep.subr.bf16.mxu0 %v2711_v11 }
 0x122   :  { %v401_v39 = vpop.f32.mrb[0].mxu0 }
 0x123   :  { %v403_v40 = vpop.f32.mrb[1].mxu0  ;;  %v2067_v42 = vmul.f32 -1.442695, %v401_v39 }
 0x124   :  { %2474 = vtanh.f32 %v403_v40  ;;  %v2068_v52 = vmul.f32 -1.442695, %v403_v40 }
 0x125   :  { %2476 = vpow2.f32 %v2067_v42 }
 0x12e   :  { %v2475_v41 = vpop.eup %2474 }
 0x12f   :  { %423 = vrot.lane.b32.xlu0 %v2475_v41, %s2656_s1  ;;  %v2477_v43 = vpop.eup %2476 }
 0x130   :  { %v414_v44 = vadd.f32 1.0, %v2477_v43 }
 0x132   :  { %2478 = vrcp.f32 %v414_v44 }
 0x13c   :  { %v2479_v45 = vpop.eup %2478 }
 0x13d   :  { %v421_v48 = vmul.f32 0.0, %v2479_v45 }
 0x1a1   :  { %v424_v46 = vpop.permute.xlu0 %423 }
 0x1a2   :  { %v426_v47 = vmul.f32 %v2479_v45, %v424_v46 }
 0x1a4   :  { %428 = vrot.lane.b32.xlu0 %v426_v47, %s2656_s1 }
 0x216   :  { %v429_v49 = vpop.permute.xlu0 %428 }
 0x217   :  { %v431_v50 = vadd.f32 %v429_v49, %v421_v48 }
 0x219   :  { %2480 = vtanh.f32 %v431_v50 }
 0x21a   :  { %2482 = vpow2.f32 %v2068_v52 }
 0x223   :  { %v2481_v51 = vpop.eup %2480 }
 0x224   :  { %434 = vrot.lane.b32.xlu1 %v2481_v51, %s2656_s1  ;;  %v2483_v53 = vpop.eup %2482 }
 0x225   :  { %v415_v54 = vadd.f32 1.0, %v2483_v53 }
 0x227   :  { %2484 = vrcp.f32 %v415_v54 }
 0x231   :  { %v2485_v55 = vpop.eup %2484 }
 0x296   :  { %v435_v56 = vpop.permute.xlu1 %434 }
 0x297   :  { %v2789_v57 = vmul.f32 %v2485_v55, %v435_v56 }
 0x299   :  { %2069 = vmatmul.mubr.msk.f32.vlgmr.msra.gmra.mrb[2].mxu0 %vm331_vm4, %v2789_v57 }
 0x29a   :  { %2290 = vmatpush1.bf16.msra.mxu0 %v2716_v14  ;;  %611 = vmatprep.mubr.f32.mxu0 %v2658_v0 }
 0x29b   :  { %2292 = vmatprep.subr.bf16.mxu0 %v2719_v16 }
 0x29e   :  { %2294 = vmatpush1.bf16.msra.mxu0 %v2727_v22 }
 0x29f   :  { %2296 = vmatprep.subr.bf16.mxu0 %v2730_v26 }
 0x2a2   :  { %2298 = vmatpush1.bf16.msra.mxu0 %v2738_v31 }
 0x2a3   :  { %2300 = vmatprep.subr.bf16.mxu0 %v2741_v32 }
 0x2a6   :  { %2302 = vmatpush1.bf16.msra.mxu0 %v2749_v34 }
 0x2a7   :  { %2304 = vmatprep.subr.bf16.mxu0 %v2711_v11 }
 0x36c   :  { %v507_v58 = vpop.f32.mrb[2].mxu0 }
 0x36d   :  { %v509_v59 = vpop.f32.mrb[3].mxu0  ;;  %v2070_v61 = vmul.f32 -1.442695, %v507_v58 }
 0x36e   :  { %2486 = vtanh.f32 %v509_v59  ;;  %v2071_v8 = vmul.f32 -1.442695, %v509_v59 }
 0x36f   :  { %2488 = vpow2.f32 %v2070_v61 }
 0x378   :  { %v2487_v60 = vpop.eup %2486 }
 0x379   :  { %529 = vrot.lane.b32.xlu1 %v2487_v60, %s2656_s1  ;;  %v2489_v62 = vpop.eup %2488 }
 0x37a   :  { %v520_v63 = vadd.f32 1.0, %v2489_v62 }
 0x37c   :  { %2490 = vrcp.f32 %v520_v63 }
 0x386   :  { %v2491_v1 = vpop.eup %2490 }
 0x387   :  { %v527_v4 = vmul.f32 %v2491_v1, %v431_v50 }
 0x3eb   :  { %v530_v2 = vpop.permute.xlu1 %529 }
 0x3ec   :  { %v532_v3 = vmul.f32 %v2491_v1, %v530_v2 }
 0x3ee   :  { %534 = vrot.lane.b32.xlu0 %v532_v3, %s2656_s1 }
 0x460   :  { %v535_v5 = vpop.permute.xlu0 %534 }
 0x461   :  { %v537_v6 = vadd.f32 %v535_v5, %v527_v4 }
 0x463   :  { %2492 = vtanh.f32 %v537_v6 }
 0x464   :  { %2494 = vpow2.f32 %v2071_v8 }
 0x46d   :  { %v2493_v7 = vpop.eup %2492 }
 0x46e   :  { %540 = vrot.lane.b32.xlu1 %v2493_v7, %s2656_s1  ;;  %v2495_v9 = vpop.eup %2494 }
 0x46f   :  { %v521_v10 = vadd.f32 1.0, %v2495_v9 }
 0x471   :  { %2496 = vrcp.f32 %v521_v10 }
 0x47b   :  { %v2497_v12 = vpop.eup %2496 }
 0x4e0   :  { %v541_v13 = vpop.permute.xlu1 %540 }
 0x4e1   :  { %v2805_v15 = vmul.f32 %v2497_v12, %v541_v13 }
 0x4e3   :  { %2072 = vmatmul.mubr.msk.f32.vlgmr.msra.gmra.mrb[4].mxu0 %vm331_vm4, %v2805_v15 }
 0x4e4   :  { %2306 = vmatpush1.bf16.msra.mxu0 %v2716_v14  ;;  %717 = vmatprep.mubr.f32.mxu0 %v2658_v0 }
 0x4e5   :  { %2308 = vmatprep.subr.bf16.mxu0 %v2719_v16 }
 0x4e8   :  { %2310 = vmatpush1.bf16.msra.mxu0 %v2727_v22 }
 0x4e9   :  { %2312 = vmatprep.subr.bf16.mxu0 %v2730_v26 }
 0x4ec   :  { %2314 = vmatpush1.bf16.msra.mxu0 %v2738_v31 }
 0x4ed   :  { %2316 = vmatprep.subr.bf16.mxu0 %v2741_v32 }
 0x4f0   :  { %2318 = vmatpush1.bf16.msra.mxu0 %v2749_v34 }
 0x4f1   :  { %2320 = vmatprep.subr.bf16.mxu0 %v2711_v11 }
 0x5b6   :  { %v613_v17 = vpop.f32.mrb[4].mxu0 }
 0x5b7   :  { %v615_v18 = vpop.f32.mrb[5].mxu0  ;;  %v2073_v20 = vmul.f32 -1.442695, %v613_v17 }
 0x5b8   :  { %2498 = vtanh.f32 %v615_v18  ;;  %v2074_v35 = vmul.f32 -1.442695, %v615_v18 }
 0x5b9   :  { %2500 = vpow2.f32 %v2073_v20 }
 0x5c2   :  { %v2499_v19 = vpop.eup %2498 }
 0x5c3   :  { %635 = vrot.lane.b32.xlu0 %v2499_v19, %s2656_s1  ;;  %v2501_v21 = vpop.eup %2500 }
 0x5c4   :  { %v626_v23 = vadd.f32 1.0, %v2501_v21 }
 0x5c6   :  { %2502 = vrcp.f32 %v626_v23 }
 0x5d0   :  { %v2503_v24 = vpop.eup %2502 }
 0x5d1   :  { %v633_v28 = vmul.f32 %v2503_v24, %v537_v6 }
 0x635   :  { %v636_v25 = vpop.permute.xlu0 %635 }
 0x636   :  { %v638_v27 = vmul.f32 %v2503_v24, %v636_v25 }
 0x638   :  { %640 = vrot.lane.b32.xlu1 %v638_v27, %s2656_s1 }
 0x6aa   :  { %v641_v29 = vpop.permute.xlu1 %640 }
 0x6ab   :  { %v643_v30 = vadd.f32 %v641_v29, %v633_v28 }
 0x6ad   :  { %2504 = vtanh.f32 %v643_v30 }
 0x6ae   :  { %2506 = vpow2.f32 %v2074_v35 }
 0x6b7   :  { %v2505_v33 = vpop.eup %2504 }
 0x6b8   :  { %646 = vrot.lane.b32.xlu0 %v2505_v33, %s2656_s1  ;;  %v2507_v36 = vpop.eup %2506 }
 0x6b9   :  { %v627_v37 = vadd.f32 1.0, %v2507_v36 }
 0x6bb   :  { %2508 = vrcp.f32 %v627_v37 }
 0x6c5   :  { %v2509_v38 = vpop.eup %2508 }
 0x72a   :  { %v647_v39 = vpop.permute.xlu0 %646 }
 0x72b   :  { %v2821_v40 = vmul.f32 %v2509_v38, %v647_v39 }
 0x72d   :  { %2075 = vmatmul.mubr.msk.f32.vlgmr.msra.gmra.mrb[6].mxu0 %vm331_vm4, %v2821_v40 }
 0x72e   :  { %2322 = vmatpush1.bf16.msra.mxu0 %v2716_v14  ;;  %823 = vmatprep.mubr.f32.mxu0 %v2658_v0 }
 0x72f   :  { %2324 = vmatprep.subr.bf16.mxu0 %v2719_v16 }
 0x732   :  { %2326 = vmatpush1.bf16.msra.mxu0 %v2727_v22 }
 0x733   :  { %2328 = vmatprep.subr.bf16.mxu0 %v2730_v26 }
 0x736   :  { %2330 = vmatpush1.bf16.msra.mxu0 %v2738_v31 }
 0x737   :  { %2332 = vmatprep.subr.bf16.mxu0 %v2741_v32 }
 0x73a   :  { %2334 = vmatpush1.bf16.msra.mxu0 %v2749_v34 }
 0x73b   :  { %2336 = vmatprep.subr.bf16.mxu0 %v2711_v11 }
 0x800   :  { %v719_v41 = vpop.f32.mrb[6].mxu0 }
 0x801   :  { %v721_v42 = vpop.f32.mrb[7].mxu0  ;;  %v2076_v44 = vmul.f32 -1.442695, %v719_v41 }
 0x802   :  { %2510 = vtanh.f32 %v721_v42  ;;  %v2077_v54 = vmul.f32 -1.442695, %v721_v42 }
 0x803   :  { %2512 = vpow2.f32 %v2076_v44 }
 0x80c   :  { %v2511_v43 = vpop.eup %2510 }
 0x80d   :  { %741 = vrot.lane.b32.xlu1 %v2511_v43, %s2656_s1  ;;  %v2513_v45 = vpop.eup %2512 }
 0x80e   :  { %v732_v46 = vadd.f32 1.0, %v2513_v45 }
 0x810   :  { %2514 = vrcp.f32 %v732_v46 }
 0x81a   :  { %v2515_v47 = vpop.eup %2514 }
 0x81b   :  { %v739_v50 = vmul.f32 %v2515_v47, %v643_v30 }
 0x87f   :  { %v742_v48 = vpop.permute.xlu1 %741 }
 0x880   :  { %v744_v49 = vmul.f32 %v2515_v47, %v742_v48 }
 0x882   :  { %746 = vrot.lane.b32.xlu0 %v744_v49, %s2656_s1 }
 0x8f4   :  { %v747_v51 = vpop.permute.xlu0 %746 }
 0x8f5   :  { %v749_v52 = vadd.f32 %v747_v51, %v739_v50 }
 0x8f7   :  { %2516 = vtanh.f32 %v749_v52 }
 0x8f8   :  { %2518 = vpow2.f32 %v2077_v54 }
 0x901   :  { %v2517_v53 = vpop.eup %2516 }
 0x902   :  { %752 = vrot.lane.b32.xlu1 %v2517_v53, %s2656_s1  ;;  %v2519_v55 = vpop.eup %2518 }
 0x903   :  { %v733_v56 = vadd.f32 1.0, %v2519_v55 }
 0x905   :  { %2520 = vrcp.f32 %v733_v56 }
 0x90f   :  { %v2521_v58 = vpop.eup %2520 }
 0x974   :  { %v753_v59 = vpop.permute.xlu1 %752 }
 0x975   :  { %v2837_v60 = vmul.f32 %v2521_v58, %v753_v59 }
 0x977   :  { %2078 = vmatmul.mubr.msk.f32.vlgmr.msra.gmra.mrb[8].mxu0 %vm331_vm4, %v2837_v60 }
 0x978   :  { %2338 = vmatpush1.bf16.msra.mxu0 %v2716_v14  ;;  %929 = vmatprep.mubr.f32.mxu0 %v2658_v0 }
 0x979   :  { %2340 = vmatprep.subr.bf16.mxu0 %v2719_v16 }
 0x97c   :  { %2342 = vmatpush1.bf16.msra.mxu0 %v2727_v22 }
 0x97d   :  { %2344 = vmatprep.subr.bf16.mxu0 %v2730_v26 }
 0x980   :  { %2346 = vmatpush1.bf16.msra.mxu0 %v2738_v31 }
 0x981   :  { %2348 = vmatprep.subr.bf16.mxu0 %v2741_v32 }
 0x984   :  { %2350 = vmatpush1.bf16.msra.mxu0 %v2749_v34 }
 0x985   :  { %2352 = vmatprep.subr.bf16.mxu0 %v2711_v11 }
 0xa4a   :  { %v825_v61 = vpop.f32.mrb[8].mxu0 }
 0xa4b   :  { %v827_v62 = vpop.f32.mrb[9].mxu0  ;;  %v2079_v1 = vmul.f32 -1.442695, %v825_v61 }
 0xa4c   :  { %2522 = vtanh.f32 %v827_v62  ;;  %v2080_v12 = vmul.f32 -1.442695, %v827_v62 }
 0xa4d   :  { %2524 = vpow2.f32 %v2079_v1 }
 0xa56   :  { %v2523_v63 = vpop.eup %2522 }
 0xa57   :  { %847 = vrot.lane.b32.xlu0 %v2523_v63, %s2656_s1  ;;  %v2525_v2 = vpop.eup %2524 }
 0xa58   :  { %v838_v3 = vadd.f32 1.0, %v2525_v2 }
 0xa5a   :  { %2526 = vrcp.f32 %v838_v3 }
 0xa64   :  { %v2527_v4 = vpop.eup %2526 }
 0xa65   :  { %v845_v7 = vmul.f32 %v2527_v4, %v749_v52 }
 0xac9   :  { %v848_v5 = vpop.permute.xlu0 %847 }
 0xaca   :  { %v850_v6 = vmul.f32 %v2527_v4, %v848_v5  ;;  %v2426_v5 = vld [vmem:[#allocation5 + $0x40] sm:$0xff]  }
 0xacb   :  { %2142 = vmatprep.subr.bf16.mxu1 %v2426_v5 }
 0xacc   :  { %852 = vrot.lane.b32.xlu1 %v850_v6, %s2656_s1  ;;  %v2427_v6 = vld [vmem:[#allocation5] sm:$0xff]  }
 0xacd   :  { %2143 = vmatpush3.bf16.msra.mxu1 %v2427_v6 }
 0xb3e   :  { %v853_v8 = vpop.permute.xlu1 %852 }
 0xb3f   :  { %v855_v9 = vadd.f32 %v853_v8, %v845_v7  ;;  %v2428_v7 = vld [vmem:[#allocation5 + $0x48] sm:$0xff]  }
 0xb40   :  { %v2429_v8 = vld [vmem:[#allocation5 + $0x8] sm:$0xff]   ;;  %2144 = vmatprep.subr.bf16.mxu1 %v2428_v7 }
 0xb41   :  { %2528 = vtanh.f32 %v855_v9  ;;  %2145 = vmatpush3.bf16.msra.mxu1 %v2429_v8 }
 0xb42   :  { %2530 = vpow2.f32 %v2080_v12  ;;  %v2432_v12 = vld [vmem:[#allocation5 + $0x58] sm:$0xff]  }
 0xb4b   :  { %v2529_v10 = vpop.eup %2528 }
 0xb4c   :  { %858 = vrot.lane.b32.xlu0 %v2529_v10, %s2656_s1  ;;  %v2531_v13 = vpop.eup %2530  ;;  %v2431_v10 = vld [vmem:[#allocation5 + $0x10] sm:$0xff]  }
 0xb4d   :  { %v839_v17 = vadd.f32 1.0, %v2531_v13  ;;  %v2433_v13 = vld [vmem:[#allocation5 + $0x18] sm:$0xff]  }
 0xb4f   :  { %2532 = vrcp.f32 %v839_v17  ;;  %v2434_v17 = vld [vmem:[#allocation5 + $0x60] sm:$0xff]  }
 0xb59   :  { %v2533_v18 = vpop.eup %2532 }
 0xbbe   :  { %v859_v19 = vpop.permute.xlu0 %858 }
 0xbbf   :  { %v2853_v20 = vmul.f32 %v2533_v18, %v859_v19  ;;  %v2435_v18 = vld [vmem:[#allocation5 + $0x20] sm:$0xff]   ;;  %v2437_v19 = vld [vmem:[#allocation5 + $0x28] sm:$0xff]  }
 0xbc1   :  { %2081 = vmatmul.mubr.msk.f32.vlgmr.msra.gmra.mrb[10].mxu0 %vm331_vm4, %v2853_v20 }
 0xbc2   :  { %2354 = vmatpush1.bf16.msra.mxu0 %v2716_v14  ;;  %1035 = vmatprep.mubr.f32.mxu0 %v2658_v0 }
 0xbc3   :  { %2356 = vmatprep.subr.bf16.mxu0 %v2719_v16 }
 0xbc6   :  { %2358 = vmatpush1.bf16.msra.mxu0 %v2727_v22 }
 0xbc7   :  { %2360 = vmatprep.subr.bf16.mxu0 %v2730_v26 }
 0xbca   :  { %2362 = vmatpush1.bf16.msra.mxu0 %v2738_v31 }
 0xbcb   :  { %2364 = vmatprep.subr.bf16.mxu0 %v2741_v32 }
 0xbce   :  { %2366 = vmatpush1.bf16.msra.mxu0 %v2749_v34 }
 0xbcf   :  { %2368 = vmatprep.subr.bf16.mxu0 %v2711_v11 }
 0xc94   :  { %v931_v21 = vpop.f32.mrb[10].mxu0 }
 0xc95   :  { %v933_v23 = vpop.f32.mrb[11].mxu0  ;;  %v2082_v25 = vmul.f32 -1.442695, %v931_v21 }
 0xc96   :  { %2534 = vtanh.f32 %v933_v23  ;;  %v2083_v38 = vmul.f32 -1.442695, %v933_v23 }
 0xc97   :  { %2536 = vpow2.f32 %v2082_v25  ;;  %v2438_v25 = vld [vmem:[#allocation5 + $0x70] sm:$0xff]  }
 0xca0   :  { %v2535_v24 = vpop.eup %2534 }
 0xca1   :  { %953 = vrot.lane.b32.xlu1 %v2535_v24, %s2656_s1  ;;  %v2537_v27 = vpop.eup %2536 }
 0xca2   :  { %v944_v28 = vadd.f32 1.0, %v2537_v27  ;;  %v2439_v27 = vld [vmem:[#allocation5 + $0x30] sm:$0xff]  }
 0xca4   :  { %2538 = vrcp.f32 %v944_v28 }
 0xcae   :  { %v2539_v29 = vpop.eup %2538 }
 0xcaf   :  { %v951_v35 = vmul.f32 %v2539_v29, %v855_v9  ;;  %v2430_v9 = vld [vmem:[#allocation5 + $0x50] sm:$0xff]  }
 0xcb0   :  { %2146 = vmatprep.subr.bf16.mxu1 %v2430_v9 }
 0xcb1   :  { %2147 = vmatpush3.bf16.msra.mxu1 %v2431_v10  ;;  %v65_v10 = vld [vmem:[#allocation2 + $0xa8] sm:$0xff] }
 0xcb2   :  { %2148 = vmatprep.subr.bf16.mxu1 %v2432_v12  ;;  %v67_v12 = vld [vmem:[#allocation2 + $0xb8] sm:$0xff] }
 0xcb5   :  { %2149 = vmatpush3.bf16.msra.mxu1 %v2433_v13  ;;  %v64_v13 = vld [vmem:[#allocation2 + $0xa0] sm:$0xff] }
 0xcb6   :  { %2150 = vmatprep.subr.bf16.mxu1 %v2434_v17  ;;  %v2383_v17 = vpack.c.bf16 %v67_v12, %v65_v10 }
 0xcb9   :  { %2151 = vmatpush3.bf16.msra.mxu1 %v2435_v18  ;;  %v69_v18 = vld [vmem:[#allocation2 + $0xc8] sm:$0xff] }
 0xd13   :  { %v954_v30 = vpop.permute.xlu1 %953 }
 0xd14   :  { %v956_v33 = vmul.f32 %v2539_v29, %v954_v30  ;;  %v2440_v30 = vld [vmem:[#allocation5 + $0x78] sm:$0xff]  }
 0xd16   :  { %958 = vrot.lane.b32.xlu0 %v956_v33, %s2656_s1 }
 0xd88   :  { %v959_v36 = vpop.permute.xlu0 %958 }
 0xd89   :  { %v961_v37 = vadd.f32 %v959_v36, %v951_v35  ;;  %v2441_v35 = vld [vmem:[#allocation5 + $0x38] sm:$0xff]  }
 0xd8b   :  { %2540 = vtanh.f32 %v961_v37 }
 0xd8c   :  { %2542 = vpow2.f32 %v2083_v38  ;;  %v2442_v38 = vld [vmem:[#allocation5 + $0xc0] sm:$0xff]  }
 0xd95   :  { %v2541_v11 = vpop.eup %2540 }
 0xd96   :  { %964 = vrot.lane.b32.xlu1 %v2541_v11, %s2656_s1  ;;  %v2543_v39 = vpop.eup %2542 }
 0xd97   :  { %v945_v41 = vadd.f32 1.0, %v2543_v39 }
 0xd99   :  { %2544 = vrcp.f32 %v945_v41 }
 0xda3   :  { %v2545_v42 = vpop.eup %2544 }
 0xe08   :  { %v965_v43 = vpop.permute.xlu1 %964 }
 0xe09   :  { %v2869_v44 = vmul.f32 %v2545_v42, %v965_v43 }
 0xe0b   :  { %2084 = vmatmul.mubr.msk.f32.vlgmr.msra.gmra.mrb[12].mxu0 %vm331_vm4, %v2869_v44 }
 0xe0c   :  { %2370 = vmatpush1.bf16.msra.mxu0 %v2716_v14  ;;  %1141 = vmatprep.mubr.f32.mxu0 %v2658_v0 }
 0xe0d   :  { %2372 = vmatprep.subr.bf16.mxu0 %v2719_v16 }
 0xe10   :  { %2374 = vmatpush1.bf16.msra.mxu0 %v2727_v22 }
 0xe11   :  { %2376 = vmatprep.subr.bf16.mxu0 %v2730_v26 }
 0xe14   :  { %2378 = vmatpush1.bf16.msra.mxu0 %v2738_v31 }
 0xe15   :  { %2380 = vmatprep.subr.bf16.mxu0 %v2741_v32 }
 0xe18   :  { %2382 = vmatpush1.bf16.msra.mxu0 %v2749_v34 }
 0xede   :  { %v1037_v45 = vpop.f32.mrb[12].mxu0 }
 0xedf   :  { %v1039_v46 = vpop.f32.mrb[13].mxu0  ;;  %v2085_v14 = vmul.f32 -1.442695, %v1037_v45 }
 0xee0   :  { %2546 = vtanh.f32 %v1039_v46  ;;  %v2086_v51 = vmul.f32 -1.442695, %v1039_v46 }
 0xee1   :  { %2548 = vpow2.f32 %v2085_v14 }
 0xeea   :  { %v2547_v47 = vpop.eup %2546 }
 0xeeb   :  { %1059 = vrot.lane.b32.xlu0 %v2547_v47, %s2656_s1  ;;  %v2549_v48 = vpop.eup %2548 }
 0xeec   :  { %v1050_v16 = vadd.f32 1.0, %v2549_v48  ;;  %v2443_v48 = vld [vmem:[#allocation5 + $0x80] sm:$0xff]  }
 0xeee   :  { %2550 = vrcp.f32 %v1050_v16 }
 0xef8   :  { %v2551_v22 = vpop.eup %2550 }
 0xef9   :  { %v1057_v31 = vmul.f32 %v2551_v22, %v961_v37 }
 0xf5d   :  { %v1060_v49 = vpop.permute.xlu0 %1059 }
 0xf5e   :  { %v1062_v26 = vmul.f32 %v2551_v22, %v1060_v49  ;;  %v2445_v22 = vld [vmem:[#allocation5 + $0x88] sm:$0xff]   ;;  %v2446_v49 = vld [vmem:[#allocation5 + $0xd0] sm:$0xff]  }
 0xf60   :  { %1064 = vrot.lane.b32.xlu1 %v1062_v26, %s2656_s1  ;;  %v2447_v26 = vld [vmem:[#allocation5 + $0x90] sm:$0xff]  }
 0xfd2   :  { %v1065_v32 = vpop.permute.xlu1 %1064 }
 0xfd3   :  { %v1067_v50 = vadd.f32 %v1065_v32, %v1057_v31  ;;  %v2448_v31 = vld [vmem:[#allocation5 + $0xd8] sm:$0xff]  }
 0xfd4   :  { %v2449_v32 = vld [vmem:[#allocation5 + $0x98] sm:$0xff]  }
 0xfd5   :  { %2552 = vtanh.f32 %v1067_v50 }
 0xfd6   :  { %2554 = vpow2.f32 %v2086_v51  ;;  %v2453_v51 = vld [vmem:[#allocation5 + $0xa8] sm:$0xff]  }
 0xfdf   :  { %v2553_v34 = vpop.eup %2552 }
 0xfe0   :  { %1070 = vrot.lane.b32.xlu0 %v2553_v34, %s2656_s1  ;;  %v2555_v52 = vpop.eup %2554  ;;  %v2452_v34 = vld [vmem:[#allocation5 + $0xe8] sm:$0xff]  }
 0xfe1   :  { %v1051_v53 = vadd.f32 1.0, %v2555_v52  ;;  %v2454_v52 = vld [vmem:[#allocation5 + $0xf0] sm:$0xff]  }
 0xfe3   :  { %2556 = vrcp.f32 %v1051_v53  ;;  %v2455_v53 = vld [vmem:[#allocation5 + $0xb0] sm:$0xff]  }
 0xfed   :  { %v2557_v54 = vpop.eup %2556 }
0x1052   :  { %v1071_v55 = vpop.permute.xlu0 %1070 }
0x1053   :  { %v2884_v56 = vmul.f32 %v2557_v54, %v1071_v55  ;;  %v2456_v54 = vld [vmem:[#allocation5 + $0xf8] sm:$0xff]  }
0x1054   :  { %v2457_v55 = vld [vmem:[#allocation5 + $0xb8] sm:$0xff]  }
0x1055   :  { %2087 = vmatmul.mubr.msk.f32.vlgmr.msra.gmra.mrb[14].mxu0 %vm331_vm4, %v2884_v56 }
0x1128   :  { %v1143_v58 = vpop.f32.mrb[14].mxu0 }
0x1129   :  { %v1145_v59 = vpop.f32.mrb[15].mxu0  ;;  %v2088_v62 = vmul.f32 -1.442695, %v1143_v58 }
0x112a   :  { %2558 = vtanh.f32 %v1145_v59 }
0x112b   :  { %2560 = vpow2.f32 %v2088_v62 }
0x1134   :  { %v2559_v61 = vpop.eup %2558 }
0x1135   :  { %1165 = vrot.lane.b32.xlu1 %v2559_v61, %s2656_s1  ;;  %v2561_v63 = vpop.eup %2560 }
0x1136   :  { %v1156_v1 = vadd.f32 1.0, %v2561_v63 }
0x1138   :  { %2562 = vrcp.f32 %v1156_v1 }
0x1142   :  { %v2563_v2 = vpop.eup %2562 }
0x1143   :  { %v1163_v21 = vmul.f32 %v2563_v2, %v1067_v50  ;;  %v2450_v50 = vld [vmem:[#allocation5 + $0xe0] sm:$0xff]  }
0x11a7   :  { %v1166_v3 = vpop.permute.xlu1 %1165 }
0x11a8   :  { %v1168_v4 = vmul.f32 %v2563_v2, %v1166_v3 }
0x11aa   :  { %1170 = vrot.lane.b32.xlu0 %v1168_v4, %s2656_s1 }
0x11ae   :  { %1183 = vrot.lane.b32.xlu0 %v2837_v60, %s2656_s1  ;;  %v2436_v60 = vld [vmem:[#allocation5 + $0x68] sm:$0xff]  }
0x11af   :  { %2152 = vmatprep.subr.bf16.mxu1 %v2436_v60  ;;  %v71_v60 = vld [vmem:[#allocation2 + $0xd8] sm:$0xff] }
0x11b0   :  { %2153 = vmatpush3.bf16.msra.mxu1 %v2437_v19 }
0x11b1   :  { %2154 = vmatprep.subr.bf16.mxu1 %v2438_v25  ;;  %v73_v25 = vld [vmem:[#allocation2 + $0xe8] sm:$0xff] }
0x11b4   :  { %2155 = vmatpush3.bf16.msra.mxu1 %v2439_v27  ;;  %v75_v27 = vld [vmem:[#allocation2 + $0xf8] sm:$0xff] }
0x11b5   :  { %2156 = vmatprep.subr.bf16.mxu1 %v2440_v30  ;;  %v72_v30 = vld [vmem:[#allocation2 + $0xe0] sm:$0xff] }
0x11b8   :  { %2157 = vmatpush3.bf16.msra.mxu1 %v2441_v35 }
0x11b9   :  { %2164 = vmatprep.subr.bf16.mxu1 %v2442_v38  ;;  %v2660_v38 = vmov 1966171168  }
0x121c   :  { %v1171_v23 = vpop.permute.xlu0 %1170 }
0x121d   :  { %v1173_v24 = vadd.f32 %v1171_v23, %v1163_v21  ;;  %v2387_v21 = vpack.c.bf16 %v71_v60, %v69_v18  ;;  %v68_v23 = vld [vmem:[#allocation2 + $0xc0] sm:$0xff]  ;;  %v2459_v18 = vld [vmem:[#allocation5 + $0x108] sm:$0xff]  }
0x121e   :  { %v2460_v60 = vld [vmem:[#allocation5 + $0x110] sm:$0xff]  }
0x121f   :  { %2564 = vtanh.f32 %v1173_v24  ;;  %v70_v24 = vld [vmem:[#allocation2 + $0xd0] sm:$0xff] }
0x1220   :  { %v1184_v28 = vpop.permute.xlu0 %1183 }
0x1221   :  { %v1194_v29 = vsel %vm331_vm4, %v2821_v40, %v1184_v28  ;;  %v2089_v40 = vmul.f32 -1.442695, %v1145_v59  ;;  %v2389_v28 = vpack.c.bf16 %v70_v24, %v68_v23 }
0x1222   :  { %v1202_v33 = vmul.f32 0.1, %v1194_v29  ;;  %vm1198_vm5 = vcmp.gt.f32.partialorder %v1194_v29, 0.0 }
0x1223   :  { %2566 = vpow2.f32 %v2089_v40  ;;  %v1491_v40 = vunpack.c.l.s4 %v2660_v38 }
0x1224   :  { %v1206_v36 = vsel %vm1198_vm5, %v1194_v29, %v1202_v33  ;;  %v2391_v29 = vpack.c.bf16 %v75_v27, %v73_v25  ;;  %v74_v33 = vld [vmem:[#allocation2 + $0xf0] sm:$0xff] }
0x1225   :  { %v1210_v37 = vpack.c.bf16 %v1206_v36, %v1206_v36  ;;  %v2393_v35 = vpack.c.bf16 %v74_v33, %v72_v30  ;;  %v1213_v36 = vlaneseq }
0x1227   :  { %1441 = vmatprep.mubr.bf16.mxu1 %v1210_v37  ;;  %v2907_v37 = vshrl.u32 %v1213_v36, 7 }
0x1229   :  { %v2565_v11 = vpop.eup %2564 }
0x122a   :  { %1176 = vrot.lane.b32.xlu1 %v2565_v11, %s2656_s1  ;;  %v1215_v11 = vsub.s32 1, %v2907_v37 }
0x122d   :  { %v2567_v39 = vpop.eup %2566 }
0x122e   :  { %1180 = vrot.lane.b32.xlu1 %v2805_v15, %s2656_s1  ;;  %v1157_v41 = vadd.f32 1.0, %v2567_v39  ;;  %v2910_v39 = vld [vmem:[#allocation2 + $0x120] sm:$0xff] }
0x1230   :  { %2568 = vrcp.f32 %v1157_v41  ;;  %v1216_v41 = vrot.slane %v2910_v39, %v1215_v11 }
0x1232   :  { %1186 = vrot.lane.b32.xlu1 %v2869_v44, %s2656_s1  ;;  %v2444_v44 = vld [vmem:[#allocation5 + $0xc8] sm:$0xff]  }
0x123a   :  { %v2569_v42 = vpop.eup %2568 }
0x129c   :  { %v1177_v43 = vpop.permute.xlu1 %1176 }
0x129d   :  { %v1179_v45 = vmul.f32 %v2569_v42, %v1177_v43  ;;  %v1492_v42 = vunpack.c.0.s8 %v1491_v40 }
0x129f   :  { %1190 = vrot.lane.b32.xlu0 %v1179_v45, %s2656_s1 }
0x12a0   :  { %v1181_v46 = vpop.permute.xlu1 %1180 }
0x12a1   :  { %v1193_v47 = vsel %vm331_vm4, %v2789_v57, %v1181_v46  ;;  %v2451_v57 = vld [vmem:[#allocation5 + $0xa0] sm:$0xff]  }
0x12a2   :  { %vm1197_vm6 = vcmp.gt.f32.partialorder %v1193_v47, 0.0  ;;  %v1201_v14 = vmul.f32 0.1, %v1193_v47 }
0x12a4   :  { %v1205_v15 = vsel %vm1197_vm6, %v1193_v47, %v1201_v14  ;;  %v1187_v58 = vpop.permute.xlu1 %1186  ;;  %v1495_v47 = vsub.s32 %v1492_v42, %v2907_v37  ;;  %v2462_v42 = vld [vmem:[#allocation5 + $0x120] sm:$0xff]  }
0x12a5   :  { %v1209_v16 = vpack.c.bf16 %v1205_v15, %v1205_v15  ;;  %v1195_v59 = vsel %vm331_vm4, %v2853_v20, %v1187_v58 }
0x12a6   :  { %v1203_v61 = vmul.f32 0.1, %v1195_v59  ;;  %vm1199_vm7 = vcmp.gt.f32.partialorder %v1195_v59, 0.0 }
0x12a7   :  { %1442 = vmatmul.mubr.bf16.vlgmr.msra.gmra.mrb[0].mxu1 %v1209_v16 }
0x12a8   :  { %2165 = vmatpush3.bf16.msra.mxu1 %v2443_v48  ;;  %v1207_v2 = vsel %vm1199_vm7, %v1195_v59, %v1203_v61 }
0x12a9   :  { %2166 = vmatprep.subr.bf16.mxu1 %v2444_v44  ;;  %v1211_v5 = vpack.c.bf16 %v1207_v2, %v1207_v2 }
0x12ac   :  { %2167 = vmatpush3.bf16.msra.mxu1 %v2445_v22 }
0x12ad   :  { %2168 = vmatprep.subr.bf16.mxu1 %v2446_v49  ;;  %v77_v49 = vld [vmem:[#allocation2 + $0x108] sm:$0xff] }
0x12b0   :  { %2169 = vmatpush3.bf16.msra.mxu1 %v2447_v26  ;;  %v79_v26 = vld [vmem:[#allocation2 + $0x118] sm:$0xff] }
0x12b1   :  { %2170 = vmatprep.subr.bf16.mxu1 %v2448_v31  ;;  %v2395_v31 = vpack.c.bf16 %v79_v26, %v77_v49 }
0x12b4   :  { %2171 = vmatpush3.bf16.msra.mxu1 %v2449_v32  ;;  %v76_v32 = vld [vmem:[#allocation2 + $0x100] sm:$0xff] }
0x12b5   :  { %2172 = vmatprep.subr.bf16.mxu1 %v2450_v50  ;;  %v78_v50 = vld [vmem:[#allocation2 + $0x110] sm:$0xff] }
0x12b8   :  { %2173 = vmatpush3.bf16.msra.mxu1 %v2451_v57 }
0x12b9   :  { %2174 = vmatprep.subr.bf16.mxu1 %v2452_v34 }
0x12bc   :  { %2175 = vmatpush3.bf16.msra.mxu1 %v2453_v51 }
0x12bd   :  { %2176 = vmatprep.subr.bf16.mxu1 %v2454_v52  ;;  %v2397_v52 = vpack.c.bf16 %v78_v50, %v76_v32 }
0x12c0   :  { %2177 = vmatpush3.bf16.msra.mxu1 %v2455_v53 }
0x12c1   :  { %2178 = vmatprep.subr.bf16.mxu1 %v2456_v54 }
0x12c4   :  { %2179 = vmatpush3.bf16.msra.mxu1 %v2457_v55 }
0x12c5   :  { %2384 = vmatprep.subr.bf16.mxu1 %v2383_v17 }
0x1311   :  { %v1191_v62 = vpop.permute.xlu0 %1190 }
0x1312   :  { %v1196_v63 = vsel %vm331_vm4, %v2884_v56, %v1191_v62  ;;  %v66_v56 = vld [vmem:[#allocation2 + $0xb0] sm:$0xff] }
0x1313   :  { %vm1200_vm8 = vcmp.gt.f32.partialorder %v1196_v63, 0.0  ;;  %v1204_v1 = vmul.f32 0.1, %v1196_v63  ;;  %v2385_v19 = vpack.c.bf16 %v66_v56, %v64_v13  ;;  %v2458_v56 = vld [vmem:[#allocation5 + $0x100] sm:$0xff]  }
0x1315   :  { %v1208_v3 = vsel %vm1200_vm8, %v1196_v63, %v1204_v1 }
0x1316   :  { %v1212_v4 = vpack.c.bf16 %v1208_v3, %v1208_v3 }
0x1318   :  { %1481 = vmatprep.mubr.bf16.mxu1 %v1212_v4 }
0x1319   :  { %1482 = vmatmul.mubr.bf16.vlgmr.msra.gmra.mrb[4].mxu1 %v1211_v5 }
0x131a   :  { %1672 = vmatprep.mubr.f32.mxu1 %v2658_v0  ;;  %2386 = vmatpush1.bf16.msra.mxu1 %v2385_v19  ;;  %v2928_v19 = vsub.s32 0, %v2907_v37 }
0x131b   :  { %2388 = vmatprep.subr.bf16.mxu1 %v2387_v21  ;;  %v2461_v21 = vld [vmem:[#allocation5 + $0x118] sm:$0xff]  }
0x131c   :  { %v1598_v23 = vrot.slane %v2910_v39, %v2928_v19 }
0x131e   :  { %2390 = vmatpush1.bf16.msra.mxu1 %v2389_v28 }
0x131f   :  { %2392 = vmatprep.subr.bf16.mxu1 %v2391_v29 }
0x1322   :  { %2394 = vmatpush1.bf16.msra.mxu1 %v2393_v35 }
0x1323   :  { %2396 = vmatprep.subr.bf16.mxu1 %v2395_v31 }
0x1326   :  { %2398 = vmatpush1.bf16.msra.mxu1 %v2397_v52 }
0x1327   :  { %2205 = vmatprep.subr.bf16.mxu1 %v2658_v0 }
0x137a   :  { %v2158_v6 = vpop.f32.mrb[0].mxu1 }
0x137b   :  { %v2159_v7 = vpop.f32.mrb[1].mxu1 }
0x137c   :  { %v2160_v8 = vadd.f32 %v2159_v7, %v2158_v6  ;;  %v2161_v20 = vpop.f32.mrb[2].mxu1 }
0x137d   :  { %v2162_v9 = vpop.f32.mrb[3].mxu1 }
0x137e   :  { %v1444_v46 = vadd.f32 %v2160_v8, %v1216_v41 }
0x13ec   :  { %v2180_v43 = vpop.f32.mrb[4].mxu1 }
0x13ed   :  { %v2181_v45 = vpop.f32.mrb[5].mxu1 }
0x13ee   :  { %v2182_v14 = vadd.f32 %v2181_v45, %v2180_v43  ;;  %v2183_v15 = vpop.f32.mrb[6].mxu1  ;;  %v2463_v43 = vld [vmem:[#allocation5 + $0x128] sm:$0xff]   ;;  %v2464_v45 = vld [vmem:[#allocation5 + $0x130] sm:$0xff]  }
0x13ef   :  { %v2184_v48 = vpop.f32.mrb[7].mxu1 }
0x13f0   :  { %v2914_v16 = vadd.f32 %v2182_v14, %v1444_v46  ;;  %v2465_v46 = vld [vmem:[#allocation5 + $0x138] sm:$0xff]  }
0x13f2   :  { %v1496_v44 = vrot.slane %v2914_v16, %v1495_v47  ;;  %v1514_v22 = vcombine.high %v2914_v16, %v2914_v16 }
0x13f4   :  { %v1497_v57 = vcombine.high %v1496_v44, %v1496_v44  ;;  %v1504_v34 = vrot.slane %v1496_v44, %v1495_v47  ;;  %v1521_v51 = vrot.slane %v1514_v22, %v1495_v47 }
0x13f6   :  { %v1511_v53 = vrot.slane %v1497_v57, %v1495_v47  ;;  %v1522_v54 = vcombine.high %v1521_v51, %v1521_v51  ;;  %v1537_v55 = vcombine.high %v1504_v34, %v1504_v34  ;;  %v1539_v58 = vcombine.low %v1504_v34, %v1504_v34 }
0x13f7   :  { %v1529_v61 = vrot.slane %v1521_v51, %v1495_v47 }
0x13f8   :  { %v1540_v59 = vcombine.low %v1511_v53, %v1537_v55  ;;  %v1536_v62 = vrot.slane %v1522_v54, %v1495_v47  ;;  %v2122_v63 = vcombine.high %v1511_v53, %v1511_v53  ;;  %v1547_v1 = vrot.slane %v1539_v58, %v1495_v47  ;;  %v81_v58 = vld [vmem:[#allocation2 + $0x128] sm:$0xff] }
0x13fa   :  { %v1554_v2 = vrot.slane %v1540_v59, %v1495_v47  ;;  %v1564_v3 = vcombine.low %v1529_v61, %v1536_v62  ;;  %v1571_v5 = vrot.slane %v2122_v63, %v1495_v47 }
0x13fc   :  { %v1555_v4 = vcombine.low %v1547_v1, %v1554_v2  ;;  %v1578_v6 = vrot.slane %v1564_v3, %v1495_v47  ;;  %v1602_v1 = vrot.slane %v81_v58, %v2928_v19 }
0x13fe   :  { %v1562_v7 = vrot.slane %v1555_v4, %v1495_v47  ;;  %v1579_v8 = vcombine.low %v1571_v5, %v1578_v6 }
0x1400   :  { %1587 = vrot.lane.b32.xlu0 %v1562_v7, %s2656_s1  ;;  %v1586_v20 = vrot.slane %v1579_v8, %v1495_v47 }
0x1402   :  { %1589 = vrot.lane.b32.xlu1 %v1586_v20, %s2656_s1 }
0x1472   :  { %v1588_v9 = vpop.permute.xlu0 %1587 }
0x1473   :  { %v1593_v12 = vsel %vm211_vm0, %v1504_v34, %v1588_v9 }
0x1474   :  { %v1590_v10 = vpop.permute.xlu1 %1589 }
0x1475   :  { %v1594_v13 = vsel %vm211_vm0, %v1511_v53, %v1590_v10 }
0x1476   :  { %v1605_v17 = vcombine.low %v1593_v12, %v1594_v13 }
0x1478   :  { %2123 = vmatmul.mubr.msk.f32.vlgmr.msra.gmra.mrb[8].mxu1 %vm331_vm4, %v1605_v17 }
0x1479   :  { %2206 = vmatpush3.bf16.msra.mxu1 %v2458_v56  ;;  %2213 = vmatprep.mubr.msk.bf16.mxu1 %vm2661_vm9, %v2658_v0 }
0x147a   :  { %2207 = vmatprep.subr.bf16.mxu1 %v2658_v0 }
0x147d   :  { %2208 = vmatpush3.bf16.msra.mxu1 %v2459_v18 }
0x147e   :  { %2209 = vmatprep.subr.bf16.mxu1 %v2658_v0 }
0x1481   :  { %2210 = vmatpush3.bf16.msra.mxu1 %v2460_v60 }
0x1482   :  { %2211 = vmatprep.subr.bf16.mxu1 %v2658_v0 }
0x1485   :  { %2212 = vmatpush3.bf16.msra.mxu1 %v2461_v21 }
0x1486   :  { %2217 = vmatprep.subr.bf16.mxu1 %v2658_v0 }
0x154b   :  { %v1674_v24 = vpop.f32.mrb[8].mxu1 }
0x154c   :  { %v1675_v25 = vadd.f32 %v1674_v24, %v1598_v23  ;;  %v1676_v27 = vpop.f32.mrb[9].mxu1 }
0x154d   :  { %v1677_v3 = vadd.f32 %v1676_v27, %v1602_v1 }
0x154e   :  { %v1679_v28 = vmax.f32 %v1675_v25, 0.0 }
0x154f   :  { %v1680_v4 = vmax.f32 %v1677_v3, 0.0 }
0x1550   :  { %1695 = vrot.lane.b32.xlu0 %v1679_v28, %s2656_s1  ;;  %v1682_v29 = vcombine.high %v1679_v28, %v1679_v28  ;;  %v1690_v33 = vrot.slane %v1679_v28, %v2928_v19 }
0x1551   :  { %v1684_v6 = vcombine.high %v1680_v4, %v1680_v4 }
0x1552   :  { %1697 = vrot.lane.b32.xlu1 %v1682_v29, %s2656_s1  ;;  %v1694_v35 = vrot.slane %v1682_v29, %v2928_v19 }
0x15c2   :  { %v1696_v30 = vpop.permute.xlu0 %1695 }
0x15c3   :  { %v1701_v11 = vmul.f32 %v1696_v30, %v1690_v33 }
0x15c4   :  { %v1698_v36 = vpop.permute.xlu1 %1697 }
0x15c5   :  { %v1702_v38 = vmul.f32 %v1698_v36, %v1694_v35 }
0x15c7   :  { %v1705_v40 = vcombine.low %v1701_v11, %v1702_v38 }
0x15c9   :  { %v1707_v41 = vpack.c.bf16 %v1705_v40, %v1705_v40 }
0x15cb   :  { %2214 = vmatmul.mubr.msk.bf16.vlgmr.msra.gmra.mrb[12].mxu1 %vm331_vm4, %v1707_v41 }
0x15cc   :  { %2225 = vmatprep.mubr.msk.bf16.mxu1 %vm2661_vm9, %v2658_v0  ;;  %2218 = vmatpush3.bf16.msra.mxu1 %v2462_v42 }
0x15cd   :  { %2219 = vmatprep.subr.bf16.mxu1 %v2658_v0 }
0x15d0   :  { %2220 = vmatpush3.bf16.msra.mxu1 %v2463_v43 }
0x15d1   :  { %2221 = vmatprep.subr.bf16.mxu1 %v2658_v0 }
0x15d4   :  { %2222 = vmatpush3.bf16.msra.mxu1 %v2464_v45 }
0x15d5   :  { %2223 = vmatprep.subr.bf16.mxu1 %v2658_v0 }
0x15d8   :  { %2224 = vmatpush3.bf16.msra.mxu1 %v2465_v46 }
0x15d9   :  { %2229 = vmatprep.subr.bf16.mxu1 %v2658_v0 }
0x169e   :  { %v1769_v47 = vpop.f32.mrb[12].mxu1 }
0x169f   :  { %v1776_v14 = vcombine.high %v1769_v47, %v1769_v47  ;;  %v1779_v15 = vsel %vm1778_vm10, %v1769_v47, -inf  ;;  %v2215_v48 = vpop.f32.mrb[13].mxu1 }
0x16a0   :  { %v1780_v44 = vrot.slane %v1779_v15, 4  ;;  %v1772_v22 = vpop.f32.mrb[14].mxu1 }
0x16a1   :  { %v1786_v49 = vsel %vm1778_vm10, %v1776_v14, -inf  ;;  %v2216_v26 = vpop.f32.mrb[15].mxu1 }
0x16a2   :  { %v1781_v31 = vmax.f32 %v1779_v15, %v1780_v44  ;;  %v1787_v32 = vrot.slane %v1786_v49, 4 }
0x16a4   :  { %v1782_v50 = vrot.slane %v1781_v31, 2  ;;  %v1788_v57 = vmax.f32 %v1786_v49, %v1787_v32 }
0x16a6   :  { %v1783_v34 = vmax.f32 %v1781_v31, %v1782_v50  ;;  %v1789_v51 = vrot.slane %v1788_v57, 2  ;;  %v1837_v50 = vsub.s32 2, %v2907_v37 }
0x16a8   :  { %v1784_v52 = vrot.slane %v1783_v34, 1  ;;  %v1790_v53 = vmax.f32 %v1788_v57, %v1789_v51  ;;  %v1838_v57 = vrot.slane %v2910_v39, %v1837_v50 }
0x16aa   :  { %v1785_v54 = vmax.f32 %v1783_v34, %v1784_v52  ;;  %v1791_v55 = vrot.slane %v1790_v53, 1 }
0x16ac   :  { %v1792_v59 = vmax.f32 %v1790_v53, %v1791_v55  ;;  %v1793_v61 = vsub.f32 %v1769_v47, %v1785_v54 }
0x16ae   :  { %v1794_v62 = vsub.f32 %v1776_v14, %v1792_v59  ;;  %v1795_v63 = vmul.f32 1.442695, %v1793_v61 }
0x16b0   :  { %2570 = vpow2.f32 %v1795_v63  ;;  %v1797_v2 = vmul.f32 1.442695, %v1794_v62  ;;  %v2466_v62 = vld [vmem:[#allocation5 + $0x140] sm:$0xff]   ;;  %v2467_v63 = vld [vmem:[#allocation5 + $0x148] sm:$0xff]  }
0x16b2   :  { %2572 = vpow2.f32 %v1797_v2 }
0x16ba   :  { %v2571_v5 = vpop.eup %2570 }
0x16bb   :  { %v1799_v7 = vmul.f32 %v2571_v5, %v1680_v4  ;;  %v1815_v8 = vsel %vm1778_vm10, %v2571_v5, 0.0 }
0x16bc   :  { %v2573_v20 = vpop.eup %2572  ;;  %v1816_v9 = vrot.slane %v1815_v8, 4 }
0x16bd   :  { %v1800_v10 = vmul.f32 %v2573_v20, %v1684_v6  ;;  %v1801_v12 = vsel %vm1778_vm10, %v1799_v7, 0.0  ;;  %v1822_v13 = vsel %vm1778_vm10, %v2573_v20, 0.0  ;;  %v2468_v6 = vld [vmem:[#allocation5 + $0x150] sm:$0xff]   ;;  %v2470_v7 = vld [vmem:[#allocation5 + $0x160] sm:$0xff]  }
0x16be   :  { %v1802_v17 = vrot.slane %v1801_v12, 4  ;;  %v1817_v56 = vadd.f32 %v1816_v9, %v1815_v8  ;;  %v1823_v18 = vrot.slane %v1822_v13, 4  ;;  %v2471_v8 = vld [vmem:[#allocation5 + $0x168] sm:$0xff]   ;;  %v2472_v20 = vld [vmem:[#allocation5 + $0x170] sm:$0xff]   ;;  %v2473_v9 = vld [vmem:[#allocation5 + $0x178] sm:$0xff]  }
0x16bf   :  { %v1808_v60 = vsel %vm1778_vm10, %v1800_v10, 0.0 }
0x16c0   :  { %v1809_v19 = vrot.slane %v1808_v60, 4  ;;  %v1818_v21 = vrot.slane %v1817_v56, 2  ;;  %v1824_v23 = vadd.f32 %v1823_v18, %v1822_v13  ;;  %v1803_v24 = vadd.f32 %v1802_v17, %v1801_v12 }
0x16c1   :  { %v1936_v17 = vsub.s32 3, %v2907_v37 }
0x16c2   :  { %v1819_v25 = vadd.f32 %v1818_v21, %v1817_v56  ;;  %v1825_v27 = vrot.slane %v1824_v23, 2  ;;  %v1810_v28 = vadd.f32 %v1809_v19, %v1808_v60  ;;  %v1804_v33 = vrot.slane %v1803_v24, 2 }
0x16c3   :  { %v1941_v56 = vsub.s32 4, %v2907_v37  ;;  %v1937_v18 = vrot.slane %v2910_v39, %v1936_v17 }
0x16c4   :  { %v1820_v29 = vrot.slane %v1819_v25, 1  ;;  %v1826_v30 = vadd.f32 %v1825_v27, %v1824_v23  ;;  %v1811_v11 = vrot.slane %v1810_v28, 2  ;;  %v1805_v40 = vadd.f32 %v1804_v33, %v1803_v24 }
0x16c5   :  { %v1942_v21 = vrot.slane %v2910_v39, %v1941_v56 }
0x16c6   :  { %v1821_v35 = vadd.f32 %v1820_v29, %v1819_v25  ;;  %v1827_v36 = vrot.slane %v1826_v30, 1  ;;  %v1812_v41 = vadd.f32 %v1811_v11, %v1810_v28  ;;  %v1806_v42 = vrot.slane %v1805_v40, 1 }
0x16c8   :  { %v1828_v38 = vadd.f32 %v1827_v36, %v1826_v30  ;;  %2574 = vrcp.f32 %v1821_v35  ;;  %v1813_v43 = vrot.slane %v1812_v41, 1  ;;  %v1807_v45 = vadd.f32 %v1806_v42, %v1805_v40 }
0x16ca   :  { %2576 = vrcp.f32 %v1828_v38  ;;  %v1814_v47 = vadd.f32 %v1813_v43, %v1812_v41 }
0x16d2   :  { %v2575_v46 = vpop.eup %2574 }
0x16d3   :  { %v1831_v14 = vmul.f32 %v2575_v46, %v1807_v45 }
0x16d4   :  { %v2577_v15 = vpop.eup %2576 }
0x16d5   :  { %v1832_v48 = vmul.f32 %v2577_v15, %v1814_v47  ;;  %v1833_v44 = vpack.c.bf16 %v1831_v14, %v1831_v14 }
0x16d7   :  { %v1834_v22 = vpack.c.bf16 %v1832_v48, %v1832_v48  ;;  %v1841_v49 = vunpack.c.l.b16 %v1833_v44 }
0x16d9   :  { %v1842_v26 = vunpack.c.l.b16 %v1834_v22 }
0x16db   :  { %v1844_v31 = vsel %vm1843_vm11, %v1842_v26, %v1841_v49 }
0x16dc   :  { %v1845_v32 = vpack.c.b16 %v1844_v31, %v1844_v31 }
0x16de   :  { %2226 = vmatmul.mubr.msk.bf16.vlgmr.msra.gmra.mrb[16].mxu1 %vm331_vm4, %v1845_v32 }
0x16df   :  { %2245 = vmatprep.mubr.msk.bf16.mxu1 %vm2661_vm9, %v2658_v0  ;;  %2230 = vmatpush3.bf16.msra.mxu1 %v2466_v62 }
0x16e0   :  { %2231 = vmatprep.subr.bf16.mxu1 %v2658_v0 }
0x16e3   :  { %2232 = vmatpush3.bf16.msra.mxu1 %v2467_v63 }
0x16e4   :  { %2233 = vmatprep.subr.bf16.mxu1 %v2658_v0 }
0x16e7   :  { %2234 = vmatpush3.bf16.msra.mxu1 %v2468_v6 }
0x16e8   :  { %2235 = vmatprep.subr.bf16.mxu1 %v2658_v0 }
0x17b1   :  { %v1907_v34 = vpop.f32.mrb[16].mxu1 }
0x17b2   :  { %v1908_v51 = vadd.f32 %v1907_v34, %v1838_v57  ;;  %v2227_v52 = vpop.f32.mrb[17].mxu1 }
0x17b3   :  { %v1910_v53 = vpop.f32.mrb[18].mxu1 }
0x17b4   :  { %v1913_v54 = vmax.f32 %v1908_v51, 0.0  ;;  %v2228_v55 = vpop.f32.mrb[19].mxu1 }
0x17b6   :  { %1915 = vrot.lane.b32.xlu0 %v1913_v54, %s2656_s1 }
0x1828   :  { %v1916_v58 = vpop.permute.xlu0 %1915 }
0x1829   :  { %v1918_v59 = vsel %vm331_vm4, %v2914_v16, %v1916_v58  ;;  %v2469_v16 = vld [vmem:[#allocation5 + $0x158] sm:$0xff]  }
0x182a   :  { %v1920_v61 = vsel %vm1919_vm12, %v1918_v59, 0.0  ;;  %2236 = vmatpush3.bf16.msra.mxu1 %v2469_v16 }
0x182b   :  { %1921 = vadd.xlane.f32.xlu1 %v1920_v61  ;;  %2237 = vmatprep.subr.bf16.mxu1 %v2658_v0 }
0x182e   :  { %2238 = vmatpush3.bf16.msra.mxu1 %v2470_v7 }
0x182f   :  { %2239 = vmatprep.subr.bf16.mxu1 %v2658_v0 }
0x1832   :  { %2240 = vmatpush3.bf16.msra.mxu1 %v2471_v8 }
0x1833   :  { %2241 = vmatprep.subr.bf16.mxu1 %v2658_v0 }
0x1836   :  { %2242 = vmatpush3.bf16.msra.mxu1 %v2472_v20 }
0x1837   :  { %2243 = vmatprep.subr.bf16.mxu1 %v2658_v0  ;;  %v1947_v0 = vsub.s32 5, %v2907_v37 }
0x1839   :  { %v1948_v27 = vrot.slane %v2910_v39, %v1947_v0 }
0x183a   :  { %2244 = vmatpush3.bf16.msra.mxu1 %v2473_v9 }
0x18b8   :  { %v1922_v1 = vpop.xlane.xlu1 %1921 }
0x18b9   :  { %v1924_v2 = vmul.f32 0.0078125, %v1922_v1 }
0x18bb   :  { %v1925_v3 = vsub.f32 %v1918_v59, %v1924_v2 }
0x18bd   :  { %v1926_v4 = vmul.f32 %v1925_v3, %v1925_v3 }
0x18bf   :  { %v1927_v5 = vsel %vm1919_vm12, %v1926_v4, 0.0 }
0x18c0   :  { %1928 = vadd.xlane.f32.xlu0 %v1927_v5 }
0x194d   :  { %v1929_v10 = vpop.xlane.xlu0 %1928 }
0x194e   :  { %v1930_v12 = vmul.f32 0.0078125, %v1929_v10 }
0x1950   :  { %v1931_v13 = vadd.f32 1e-05, %v1930_v12 }
0x1952   :  { %2578 = vrsqrt.f32 %v1931_v13 }
0x195c   :  { %v2579_v60 = vpop.eup %2578 }
0x195d   :  { %v1933_v19 = vmul.f32 %v2579_v60, %v1925_v3 }
0x195f   :  { %v1938_v23 = vmul.f32 %v1937_v18, %v1933_v19 }
0x1961   :  { %v1943_v24 = vadd.f32 %v1942_v21, %v1938_v23 }
0x1963   :  { %v1944_v25 = vpack.c.bf16 %v1943_v24, %v1943_v24 }
0x1965   :  { %2246 = vmatmul.mubr.bf16.vlgmr.msra.gmra.mrb[20].mxu1 %v1944_v25 }
0x1a38   :  { %v2031_v28 = vpop.f32.mrb[20].mxu1 }
0x1a39   :  { %v2032_v29 = vadd.f32 %v2031_v28, %v1948_v27  ;;  %v2247_v30 = vpop.f32.mrb[21].mxu1 }
0x1a3a   :  { %v2034_v33 = vpop.f32.mrb[22].mxu1 }
0x1a3b   :  { %v2038_v35 = vmul.f32 0.3, %v2032_v29  ;;  %v2248_v36 = vpop.f32.mrb[23].mxu1  ;;  %vm2037_vm13 = vcmp.gt.f32.partialorder %v2032_v29, 0.0 }
0x1a3d   :  { %v2039_v11 = vsel %vm2037_vm13, %v2032_v29, %v2038_v35 }
0x1a3e   :  { %2040 = vst [vmem:[#allocation7] sm:$0x3] %v2039_v11 }
0x1a3f   :  { %2635 = shalt.err (!%p2632_p6)
}
0x1a40   :  { %s2636_s4 = scalar_lea.hbm %s2990_s3, 32 }
0x1a41   :  { %p2637_p7 = scmp.ne.s32.totalorder %s2990_s3, %s2636_s4  ;;  %p2640_p8 = scmp.lt.u32.totalorder %s2636_s4, %s2990_s3 }
0x1a43   :  { %p2642_p9 = pnand %p2640_p8, %p2637_p7 }
0x1a45   :  { %2645 = shalt.err (!%p2642_p9)
}
0x1a46   :  { %2050 = dma.vmem_to_hbm [thread:$0]  %s2048_s27, 32, %s2990_s3, [#allocation4]  }
0x1a47   :  { %2650 = dma.done.wait [#allocation4], 32  }
0x1a48   :  { %2651 = vsyncadd [#allocation4], 4294967264 }
0x1a49   :  { %2054 = vsyncpa [#allocation3], 1 }
0x1a4a   :  { %2055 = vsyncpa [#allocation6], 1 }
0x1a4b   :  { %2056 = vsyncpa [#allocation4], 1 }

</bundles_post_ra>
